<compile_context>
chip_gen: v5e
topology: v5e:2x2
jax: 0.10.0
libtpu: 0.0.40
codegen_flags: <defaults>
</compile_context>

<pallas_src>
import functools
import math

import jax
import jax.numpy as jnp
from jax import lax
from jax.experimental import pallas as pl
from jax.experimental.pallas import tpu as pltpu

_MASK = -1.0e30  # large finite negative: exp(mask - m) underflows to 0, no inf-inf


# ---------------------------------------------------------------------------
# Kernels
# ---------------------------------------------------------------------------

def _qkv_attn_kernel(qkv_ref, o_ref, *, ch, ch_ext, scale, length, t_pad):
    """Monolithic path. qkv_ref block: (1, 3, hb, ch, Tp); o_ref: (1, hb, ch, Tp)."""
    q = qkv_ref[0, 0]                                   # (hb, ch, Tp) native dtype
    k = qkv_ref[0, 1]
    v = qkv_ref[0, 2]

    s = jnp.asarray(scale, q.dtype)                     # ch ** -0.25, as in PyTorch
    qs = q * s
    ks = k * s

    # scores[h, t, s] = sum_c qs[h, c, t] * ks[h, c, s]   ('hct,hcs->hts')
    scores = lax.dot_general(
        qs, ks,
        dimension_numbers=(((1,), (1,)), ((0,), (0,))),
        preferred_element_type=jnp.float32)             # (hb, Tp, Tp) f32

    if t_pad != length:                                 # mask padded key columns
        col = lax.broadcasted_iota(jnp.int32, scores.shape, 2)
        scores = jnp.where(col < length, scores, _MASK)

    m = jnp.max(scores, axis=-1, keepdims=True)         # (hb, Tp, 1) f32
    # Single T^2 temporary besides scores: exp and cast fused in one expression.
    e_c = jnp.exp(scores - m).astype(v.dtype)           # (hb, Tp, Tp) native dtype

    # Fused a-matmul + row-sum: append sublane-aligned ones rows to v so one
    # MXU pass produces both a (rows < ch) and the softmax denominator (row ch).
    hb = v.shape[0]
    ones_rows = jnp.ones((hb, ch_ext - ch, v.shape[2]), dtype=v.dtype)
    v_ext = jnp.concatenate([v, ones_rows], axis=1)     # (hb, ch_ext, Tp)

    # res[h, c, t] = sum_s v_ext[h, c, s] * e_c[h, t, s]   ('hcs,hts->hct')
    res = lax.dot_general(
        v_ext, e_c,
        dimension_numbers=(((2,), (2,)), ((0,), (0,))),
        preferred_element_type=jnp.float32)             # (hb, ch_ext, Tp) f32

    a = res[:, :ch, :]
    l = res[:, ch:ch + 1, :]                            # (hb, 1, Tp) row sums
    o_ref[0] = (a * pl.reciprocal(l, approx=True)).astype(o_ref.dtype)


def _qkv_attn_flash_kernel(q_ref, k_ref, v_ref, o_ref, m_sc, acc_sc, *,
                           ch, ch_ext, scale, length, t_pad, s_tile):
    """Key-tiled online-softmax path.

    q_ref: (1, 1, hb, ch, Tp) (resident across the s axis);
    k_ref / v_ref: (1, 1, hb, ch, ts); o_ref: (1, hb, ch, Tp);
    m_sc: (hb, 1, Tp) f32; acc_sc: (hb, ch_ext, Tp) f32 (rows [0,ch) = a, row ch = l).
    """
    si = pl.program_id(2)

    @pl.when(si == 0)
    def _():
        m_sc[...] = jnp.full_like(m_sc, _MASK)
        acc_sc[...] = jnp.zeros_like(acc_sc)

    q = q_ref[0, 0]                                     # (hb, ch, Tp)
    k = k_ref[0, 0]                                     # (hb, ch, ts)
    v = v_ref[0, 0]                                     # (hb, ch, ts)

    sc = jnp.asarray(scale, q.dtype)
    qs = q * sc
    ks = k * sc

    # Transposed scores keep the per-query stats lane-oriented (hb, 1, Tp):
    # scores_t[h, s, t] = sum_c ks[h, c, s] * qs[h, c, t].
    scores_t = lax.dot_general(
        ks, qs,
        dimension_numbers=(((1,), (1,)), ((0,), (0,))),
        preferred_element_type=jnp.float32)             # (hb, ts, Tp) f32

    if t_pad != length:                                 # mask padded key rows
        row = lax.broadcasted_iota(jnp.int32, scores_t.shape, 1) + si * s_tile
        scores_t = jnp.where(row < length, scores_t, _MASK)

    m_prev = m_sc[...]                                  # (hb, 1, Tp)
    m_new = jnp.maximum(m_prev, jnp.max(scores_t, axis=1, keepdims=True))
    alpha = jnp.exp(m_prev - m_new)                     # (hb, 1, Tp)
    e_c = jnp.exp(scores_t - m_new).astype(v.dtype)     # (hb, ts, Tp) native dtype

    hb = v.shape[0]
    ones_rows = jnp.ones((hb, ch_ext - ch, v.shape[2]), dtype=v.dtype)
    v_ext = jnp.concatenate([v, ones_rows], axis=1)     # (hb, ch_ext, ts)

    # upd[h, c, t] = sum_s v_ext[h, c, s] * e_c[h, s, t]
    upd = lax.dot_general(
        v_ext, e_c,
        dimension_numbers=(((2,), (1,)), ((0,), (0,))),
        preferred_element_type=jnp.float32)             # (hb, ch_ext, Tp) f32

    m_sc[...] = m_new
    acc_sc[...] = alpha * acc_sc[...] + upd

    @pl.when(si == pl.num_programs(2) - 1)
    def _():
        acc = acc_sc[...]
        a = acc[:, :ch, :]
        l = acc[:, ch:ch + 1, :]
        o_ref[0] = (a * pl.reciprocal(l, approx=True)).astype(o_ref.dtype)


# ---------------------------------------------------------------------------
# Sizing helpers (generation-aware VMEM policy)
# ---------------------------------------------------------------------------

def _round_up(x, m):
    return ((x + m - 1) // m) * m


def _sublane_multiple(dtype):
    itemsize = jnp.dtype(dtype).itemsize
    return max(8, 32 // itemsize)        # f32 -> 8, bf16 -> 16, int8/fp8 -> 32


def _vmem_capacity_bytes():
    """Physical VMEM of the current generation; conservative fallback = 64 MiB (v7x per-TC)."""
    try:
        info = pltpu.get_tpu_info()
        cap = getattr(info, "vmem_capacity_bytes", None)
        if cap:
            return int(cap)
    except Exception:
        pass
    return 64 * 1024 * 1024


def _mono_vmem_bytes(hb, ch, ch_ext, tp, itemsize):
    """Per-grid-step VMEM footprint of the monolithic path (heuristic, conservative)."""
    io = 2 * (3 * hb * ch * tp + hb * ch * tp) * itemsize      # double-buffered in + out
    scores = hb * tp * tp * 4                                  # f32 scores
    e = hb * tp * tp * itemsize                                # native-dtype exp tile
    slack = hb * tp * tp * 4                                   # margin for a fused sub/where temp
    vext = hb * ch_ext * tp * (itemsize + 4)                   # v_ext + f32 matmul result
    return io + scores + e + slack + vext


def _flash_vmem_bytes(hb, ch, ch_ext, tp, ts, itemsize):
    """Per-grid-step VMEM footprint of the flash path (heuristic, conservative)."""
    q_io = 2 * hb * ch * tp * itemsize
    kv_io = 2 * 2 * hb * ch * ts * itemsize
    out_io = 2 * hb * ch * tp * itemsize
    scratch = hb * (1 + ch_ext) * tp * 4                       # m + fused (a,l) accumulator
    tile_tmp = hb * ts * tp * (4 + itemsize + 4)               # scores f32 + e native + margin
    vext = hb * ch_ext * ts * itemsize + hb * ch_ext * tp * 4
    return q_io + kv_io + out_io + scratch + tile_tmp + vext


def _largest_fitting_hb(n_heads, footprint_fn, budget):
    """Largest divisor of n_heads whose footprint fits; None if even hb=1 does not."""
    for hb in range(n_heads, 0, -1):
        if n_heads % hb == 0 and footprint_fn(hb) <= budget:
            return hb
    return None


def _pick_s_tile(t_pad):
    for cand in (512, 384, 256, 128):
        if t_pad % cand == 0:
            return cand
    return 128


# ---------------------------------------------------------------------------
# Wrapper
# ---------------------------------------------------------------------------

def qkv_attention(qkv, n_heads, *, force_flash=False):
    """Pallas equivalent of QKVAttention.forward.

    qkv : [N, 3*H*C, T]  ->  returns [N, H*C, T]
    """
    bs, width, length = qkv.shape
    assert width % (3 * n_heads) == 0
    ch = width // (3 * n_heads)
    dtype = qkv.dtype
    itemsize = jnp.dtype(dtype).itemsize
    sub = _sublane_multiple(dtype)
    ch_ext = ch + (sub - ch % sub if ch % sub else sub)   # >= ch+1 ones rows, sublane aligned

    # Lane-dense T: pad last dim to a multiple of 128 (masked in-kernel, sliced after).
    t_pad = _round_up(length, 128)
    qkv_p = qkv if t_pad == length else jnp.pad(
        qkv, ((0, 0), (0, 0), (0, t_pad - length)))
    # Free (contiguous) reshape: [N, 3*H*C, Tp] -> [N, 3, H, C, Tp].
    qkv5 = qkv_p.reshape(bs, 3, n_heads, ch, t_pad)

    # Generation-aware VMEM policy: ~62% of physical VMEM as head-group budget,
    # ~81% as the scoped-vmem ceiling (v5e/v6e: 80 / 104 MiB; v7x: 40 / 52 MiB).
    vmem_cap = _vmem_capacity_bytes()
    budget = (vmem_cap * 5) // 8
    cap_limit = (vmem_cap * 13) // 16

    scale = float(ch) ** -0.25            # applied to BOTH q and k, as in the module
    n_groups_of = lambda hb: n_heads // hb

    mono_hb = _largest_fitting_hb(
        n_heads, lambda hb: _mono_vmem_bytes(hb, ch, ch_ext, t_pad, itemsize), budget)
    use_flash = force_flash or mono_hb is None

    if not use_flash:
        hb = mono_hb
        footprint = _mono_vmem_bytes(hb, ch, ch_ext, t_pad, itemsize)
        vmem_limit = int(min(max(footprint + (8 << 20), 32 << 20), cap_limit))
        kernel = functools.partial(
            _qkv_attn_kernel, ch=ch, ch_ext=ch_ext, scale=scale,
            length=length, t_pad=t_pad)
        out = pl.pallas_call(
            kernel,
            out_shape=jax.ShapeDtypeStruct((bs, n_heads, ch, t_pad), dtype),
            grid=(bs, n_groups_of(hb)),
            in_specs=[
                pl.BlockSpec((1, 3, hb, ch, t_pad),
                             lambda n, g: (n, 0, g, 0, 0)),
            ],
            out_specs=pl.BlockSpec((1, hb, ch, t_pad),
                                   lambda n, g: (n, g, 0, 0)),
            compiler_params=pltpu.CompilerParams(
                dimension_semantics=("parallel", "parallel"),
                vmem_limit_bytes=vmem_limit),
        )(qkv5)
    else:
        # Key-tiled online-softmax fallback (long T / small VMEM, or forced).
        s_tile = None
        hb = None
        for cand in (512, 384, 256, 128):
            if t_pad % cand != 0:
                continue
            fit = _largest_fitting_hb(
                n_heads,
                lambda h: _flash_vmem_bytes(h, ch, ch_ext, t_pad, cand, itemsize),
                budget)
            if fit is not None:
                s_tile, hb = cand, fit
                break
        if hb is None:
            # TODO(synk): add query tiling (second grid axis over T) for sequences
            # whose per-head flash footprint still exceeds the VMEM budget.
            raise ValueError(
                f"QKV attention: sequence length {length} (padded {t_pad}) does not "
                f"fit the VMEM budget ({budget} B) even with hb=1 / s_tile=128.")

        footprint = _flash_vmem_bytes(hb, ch, ch_ext, t_pad, s_tile, itemsize)
        vmem_limit = int(min(max(footprint + (8 << 20), 32 << 20), cap_limit))
        n_s = t_pad // s_tile
        kernel = functools.partial(
            _qkv_attn_flash_kernel, ch=ch, ch_ext=ch_ext, scale=scale,
            length=length, t_pad=t_pad, s_tile=s_tile)
        out = pl.pallas_call(
            kernel,
            out_shape=jax.ShapeDtypeStruct((bs, n_heads, ch, t_pad), dtype),
            grid=(bs, n_groups_of(hb), n_s),
            in_specs=[
                pl.BlockSpec((1, 1, hb, ch, t_pad),
                             lambda n, g, s: (n, 0, g, 0, 0)),   # q (resident over s)
                pl.BlockSpec((1, 1, hb, ch, s_tile),
                             lambda n, g, s: (n, 1, g, 0, s)),   # k tile
                pl.BlockSpec((1, 1, hb, ch, s_tile),
                             lambda n, g, s: (n, 2, g, 0, s)),   # v tile
            ],
            out_specs=pl.BlockSpec((1, hb, ch, t_pad),
                                   lambda n, g, s: (n, g, 0, 0)),
            scratch_shapes=[
                pltpu.VMEM((hb, 1, t_pad), jnp.float32),         # running max m
                pltpu.VMEM((hb, ch_ext, t_pad), jnp.float32),    # fused (a, l) accumulator
            ],
            compiler_params=pltpu.CompilerParams(
                dimension_semantics=("parallel", "parallel", "arbitrary"),
                vmem_limit_bytes=vmem_limit),
        )(qkv5, qkv5, qkv5)

    if t_pad != length:
        out = out[..., :length]
    # Free reshape back to the module's [N, H*C, T] layout.
    return out.reshape(bs, n_heads * ch, length)


# ---------------------------------------------------------------------------
# Reference + self-test
# ---------------------------------------------------------------------------

def _reference(qkv, n_heads):
    """Pure-JAX reference mirroring the PyTorch code."""
    bs, width, length = qkv.shape
    ch = width // (3 * n_heads)
    q, k, v = jnp.split(qkv, 3, axis=1)
    B = bs * n_heads
    q = q.reshape(B, ch, length)
    k = k.reshape(B, ch, length)
    v = v.reshape(B, ch, length)
    scale = 1.0 / math.sqrt(math.sqrt(ch))
    weight = jnp.einsum("bct,bcs->bts", q * scale, k * scale)
    weight = jax.nn.softmax(weight.astype(jnp.float32), axis=-1).astype(weight.dtype)
    a = jnp.einsum("bts,bcs->bct", weight, v)
    return a.reshape(bs, -1, length)


if __name__ == "__main__":
    key = jax.random.PRNGKey(0)
    k1, k2 = jax.random.split(key)

    # --- Test 1: module-consistent small shape, monolithic path (T padded 16->128).
    n_heads = 4
    N, C, T = 2, 8, 16
    qkv = jax.random.normal(k1, (N, 3 * n_heads * C, T), dtype=jnp.float32)

    out = jax.block_until_ready(qkv_attention(qkv, n_heads))
    assert out.shape == (N, n_heads * C, T), out.shape
    ref = jax.block_until_ready(_reference(qkv, n_heads))
    err = float(jnp.max(jnp.abs(out - ref)))
    assert jnp.allclose(out, ref, atol=5e-3, rtol=5e-3), err

    # --- Test 2: non-128-aligned T spanning multiple key tiles; exercise both
    # the monolithic masked-padding path and the key-tiled (flash) path.
    n_heads2, N2, C2, T2 = 2, 1, 8, 300
    qkv2 = jax.random.normal(k2, (N2, 3 * n_heads2 * C2, T2), dtype=jnp.float32)
    ref2 = jax.block_until_ready(_reference(qkv2, n_heads2))

    out2 = jax.block_until_ready(qkv_attention(qkv2, n_heads2))  # monolithic, padded/masked
    assert out2.shape == (N2, n_heads2 * C2, T2), out2.shape
    err2 = float(jnp.max(jnp.abs(out2 - ref2)))
    assert jnp.allclose(out2, ref2, atol=5e-3, rtol=5e-3), err2

    out3 = jax.block_until_ready(qkv_attention(qkv2, n_heads2, force_flash=True))
    err3 = float(jnp.max(jnp.abs(out3 - ref2)))
    assert jnp.allclose(out3, ref2, atol=5e-3, rtol=5e-3), err3

    print("KERNEL_OK")
</pallas_src>

<mosaic_0001>
module attributes {stable_mosaic.version = 11 : i64} {
  func.func @_qkv_attn_kernel(%arg0: i32, %arg1: i32, %arg2: memref<1x3x4x8x128xf32, #tpu.memory_space<vmem>>, %arg3: memref<1x4x8x128xf32, #tpu.memory_space<vmem>>) attributes {dimension_semantics = [#tpu.dimension_semantics<parallel>, #tpu.dimension_semantics<parallel>], iteration_bounds = array<i64: 2, 1>, scalar_prefetch = 0 : i64, scratch_operands = 0 : i64, tpu.core_type = #tpu.core_type<tc>, window_params = [{transform_indices = @transform_0, window_bounds = array<i64: 1, 3, 4, 8, 128>}, {transform_indices = @transform_1, window_bounds = array<i64: 1, 4, 8, 128>}]} {
    %c0 = arith.constant 0 : index
    %c0_0 = arith.constant 0 : index
    %c0_1 = arith.constant 0 : index
    %c0_2 = arith.constant 0 : index
    %c0_3 = arith.constant 0 : index
    %0 = vector.load %arg2[%c0, %c0_0, %c0_1, %c0_2, %c0_3] : memref<1x3x4x8x128xf32, #tpu.memory_space<vmem>>, vector<1x1x4x8x128xf32>
    %1 = vector.shape_cast %0 : vector<1x1x4x8x128xf32> to vector<4x8x128xf32>
    %c0_4 = arith.constant 0 : index
    %c1 = arith.constant 1 : index
    %c0_5 = arith.constant 0 : index
    %c0_6 = arith.constant 0 : index
    %c0_7 = arith.constant 0 : index
    %2 = vector.load %arg2[%c0_4, %c1, %c0_5, %c0_6, %c0_7] : memref<1x3x4x8x128xf32, #tpu.memory_space<vmem>>, vector<1x1x4x8x128xf32>
    %3 = vector.shape_cast %2 : vector<1x1x4x8x128xf32> to vector<4x8x128xf32>
    %c0_8 = arith.constant 0 : index
    %c2 = arith.constant 2 : index
    %c0_9 = arith.constant 0 : index
    %c0_10 = arith.constant 0 : index
    %c0_11 = arith.constant 0 : index
    %4 = vector.load %arg2[%c0_8, %c2, %c0_9, %c0_10, %c0_11] : memref<1x3x4x8x128xf32, #tpu.memory_space<vmem>>, vector<1x1x4x8x128xf32>
    %5 = vector.shape_cast %4 : vector<1x1x4x8x128xf32> to vector<4x8x128xf32>
    %cst = arith.constant 0.594603539 : f32
    %6 = vector.broadcast %cst : f32 to vector<4x8x128xf32>
    %7 = arith.mulf %1, %6 : vector<4x8x128xf32>
    %cst_12 = arith.constant 0.594603539 : f32
    %8 = vector.broadcast %cst_12 : f32 to vector<4x8x128xf32>
    %9 = arith.mulf %3, %8 : vector<4x8x128xf32>
    %cst_13 = arith.constant dense<0.000000e+00> : vector<4x128x128xf32>
    %10 = tpu.matmul %7, %9, %cst_13 {dimension_numbers = #tpu.dot_dimension_numbers<[1], [1], [2], [2], [0, 0, 0, 2, 1, 2], [0], [0]>} : vector<4x8x128xf32>, vector<4x8x128xf32>, vector<4x128x128xf32> -> vector<4x128x128xf32>
    %11 = tpu.iota {dimensions = array<i32: 2>} : vector<4x128x128xi32>
    %c16_i32 = arith.constant 16 : i32
    %12 = vector.broadcast %c16_i32 : i32 to vector<4x128x128xi32>
    %13 = arith.cmpi slt, %11, %12 : vector<4x128x128xi32>
    %cst_14 = arith.constant -1.000000e+30 : f32
    %14 = vector.broadcast %cst_14 : f32 to vector<4x128x128xf32>
    %15 = arith.select %13, %10, %14 : vector<4x128x128xi1>, vector<4x128x128xf32>
    %cst_15 = arith.constant dense<0xFF800000> : vector<4x128xf32>
    %16 = vector.multi_reduction <maximumf>, %15, %cst_15 [2] : vector<4x128x128xf32> to vector<4x128xf32>
    %17 = vector.shape_cast %16 : vector<4x128xf32> to vector<4x128x1xf32>
    %18 = vector.broadcast %17 : vector<4x128x1xf32> to vector<4x128x128xf32>
    %19 = arith.subf %15, %18 : vector<4x128x128xf32>
    %20 = math.exp %19 : vector<4x128x128xf32>
    %cst_16 = arith.constant 1.000000e+00 : f32
    %21 = vector.broadcast %cst_16 : f32 to vector<4x8x128xf32>
    %22 = tpu.concatenate %5, %21 in 1 : vector<4x8x128xf32>, vector<4x8x128xf32> -> vector<4x16x128xf32>
    %cst_17 = arith.constant dense<0.000000e+00> : vector<4x16x128xf32>
    %23 = tpu.matmul %22, %20, %cst_17 {dimension_numbers = #tpu.dot_dimension_numbers<[2], [2], [1], [1], [0, 0, 0, 1, 1, 1], [0], [0]>} : vector<4x16x128xf32>, vector<4x128x128xf32>, vector<4x16x128xf32> -> vector<4x16x128xf32>
    %24 = vector.extract_strided_slice %23 {offsets = [0, 0, 0], sizes = [4, 8, 128], strides = [1, 1, 1]} : vector<4x16x128xf32> to vector<4x8x128xf32>
    %25 = vector.extract_strided_slice %23 {offsets = [0, 8, 0], sizes = [4, 1, 128], strides = [1, 1, 1]} : vector<4x16x128xf32> to vector<4x1x128xf32>
    %26 = tpu.reciprocal %25 {approx = true} : vector<4x1x128xf32> -> vector<4x1x128xf32>
    %27 = vector.broadcast %26 : vector<4x1x128xf32> to vector<4x8x128xf32>
    %28 = arith.mulf %24, %27 : vector<4x8x128xf32>
    %c0_18 = arith.constant 0 : index
    %c0_19 = arith.constant 0 : index
    %c0_20 = arith.constant 0 : index
    %c0_21 = arith.constant 0 : index
    %29 = vector.load %arg3[%c0_18, %c0_19, %c0_20, %c0_21] : memref<1x4x8x128xf32, #tpu.memory_space<vmem>>, vector<1x4x8x128xf32>
    %30 = vector.shape_cast %29 : vector<1x4x8x128xf32> to vector<4x8x128xf32>
    %31 = vector.shape_cast %28 : vector<4x8x128xf32> to vector<1x4x8x128xf32>
    tpu.vector_store %arg3[%c0_18, %c0_19, %c0_20, %c0_21], %31 {strides = array<i32>} : memref<1x4x8x128xf32, #tpu.memory_space<vmem>>, vector<1x4x8x128xf32>,
    return
  }
  func.func @transform_0(%arg0: i32, %arg1: i32) -> (i32, i32, i32, i32, i32) {
    %c0_i32 = arith.constant 0 : i32
    %c0_i32_0 = arith.constant 0 : i32
    %c0_i32_1 = arith.constant 0 : i32
    %c0_i32_2 = arith.constant 0 : i32
    return %arg0, %c0_i32, %arg1, %c0_i32_0, %c0_i32_1 : i32, i32, i32, i32, i32
  }
  func.func @transform_1(%arg0: i32, %arg1: i32) -> (i32, i32, i32, i32) {
    %c0_i32 = arith.constant 0 : i32
    %c0_i32_0 = arith.constant 0 : i32
    %c0_i32_1 = arith.constant 0 : i32
    return %arg0, %arg1, %c0_i32, %c0_i32_0 : i32, i32, i32, i32
  }
}

</mosaic_0001>

<bundles_post_ra>
// kernel: tpu_custom_call.1
= control target key start
LH: loop header
LB: loop body
LE: loop exit
PB: predicated region body
PF: predicated region fallthrough
CT: control target
= control target key end

     0   :  { %6 = vsyncpa [#allocation3], 0  ;;  %s2548_s0 = inlined_call_operand.hbm [shape: f32[2,3,4,8,128], index: 0, kind: input, shape index: {}]   ;;  %s2549_s1 = inlined_call_operand.hbm [shape: f32[2,4,8,128], index: 1, kind: output, shape index: {}]  }
   0x1   :  { %8 = vsyncpa [#allocation3 + $0x1], 0 }
   0x2   :  { %9 = vsyncpa [#allocation4], 0 }
   0x3   :  { %11 = vsyncpa [#allocation4 + $0x1], 0  ;;  %s1781_s6 = smov 0   ;;  %s1783_s7 = smov 0  }
   0x4   :  { %s1785_s8 = smov 0   ;;  %s1787_s9 = smov 0  }
   0x5   :  { %s1789_s10 = smov 0   ;;  %s1791_s11 = smov 0  }
   0x6 LB: > { %s1360_s12 = sadd.s32 4294967295, %s1764_s11   ;;  %s1361_s13 = sadd.s32 4294967294, %s1764_s11   ;;  %s1764_s11 = sphi %s1791_s11, %s17_s11   ;;  %s1760_s10 = sphi %s1789_s10, %s2686_s10   ;;  %s1756_s9 = sphi %s1787_s9, %s2685_s9   ;;  %s1752_s8 = sphi %s1785_s8, %s2684_s8   ;;  %s1748_s7 = sphi %s1783_s7, %s2683_s7   ;;  %s1744_s6 = sphi %s1781_s6, %s2682_s6  }
   0x7   : > { %s29_s14 = sadd.s32 1, %s1760_s10  ;;  %s38_s15 = sadd.s32 1, %s1752_s8 }
   0x8   : > { %p31_p0 = scmp.ge.s32.totalorder %s29_s14, 2  ;;  %p45_p1 = scmp.ne.s32.totalorder %s1752_s8, %s1748_s7 }
   0x9   : > { %p46_p2 = scmp.eq.s32.totalorder %s1764_s11, 0  ;;  %p51_p3 = scmp.ne.s32.totalorder %s1748_s7, %s1744_s6 }
   0xa   : > { %s2688_s14 = smov (%p31_p0, %s29_s14), 0  ;;  %p52_p5 = scmp.eq.s32.totalorder %s1360_s12, 0 }
   0xb   : > { %p1822_p4 = por %p46_p2, %p45_p1  ;;  %s33_s17 = ssub.s32 %s1760_s10, %s2688_s14 }
   0xc   : > { %p77_p6 = scmp.eq.s32.totalorder %s1360_s12, 1  ;;  %p36_p7 = scmp.eq.s32.totalorder %s33_s17, 0 }
   0xd   : > { %p1828_p8 = por %p52_p5, %p51_p3  ;;  %p83_p10 = scmp.eq.s32.totalorder %s1361_s13, 1 }
   0xe   : > { %p1832_p9 = por %p77_p6, %p45_p1  ;;  %p1363_p12 = scmp.ge.s32.totalorder %s1764_s11, 2 }
   0xf   : > { %s1837_s20 = scalar_select %p36_p7, %s1752_s8, %s38_s15  }
  0x10   : > { %p1839_p11 = por %p83_p10, %p51_p3  ;;  %p1460_p13 = scmp.lt.s32.totalorder %s1764_s11, 2 }
  0x11   : > { %s103_s22 = sand.u32 1, %s1752_s8   ;;  %s1446_s24 = smul.u32 96, %s1760_s10 }
  0x12   : > { %s1445_s23 = smul.u32 96, %s103_s22  ;;  %p1453_p0 = pnand %p1460_p13, %p1822_p4 }
  0x13   : > { %s114_s27 = scalar_lea.hbm %s2548_s0, %s1446_s24  ;;  %p1365_p1 = scmp.ge.s32.totalorder %s1764_s11, 1 }
  0x14   : > { %s107_s28 = scalar_lea.vmem [#allocation2], %s1445_s23  ;;  %s115_s30 = sshll.u32 %s114_s27, 4  ;;  %s116_s30 = int_to_ptr.hbm [resolvable:$true] %s115_s30 }
  0x15   : > { %s117_s29 = sshll.u32 %s107_s28, 4  ;;  %s104_s2 = scalar_lea.sflag [#allocation3], %s103_s22  ;;  %s118_s29 = int_to_ptr.vmem [resolvable:$true] %s117_s29 }
  0x16   : > { %s1766_s3 = smov 128   ;;  %s1767_s4 = smov 8  }
  0x17   : > { %1455 = dma.hbm_to_vmem [thread:$0]  (!%p1453_p0), %s116_s30, 1536, %s118_s29, %s104_s2, %s1766_s3, %s1766_s3, %s1767_s4  }
  0x18   : > { %p125_p2 = scmp.lt.s32.totalorder %s1764_s11, 3 }
  0x1a   : > { %p126_p3 = pnand %p1365_p1, %p125_p2 }
  0x1c   : > { %129 = sbr.rel (%p126_p3) target bundleno = 1218 (0x4c2), region = 24 }
  0x21   : > { %s1855_s5 = sand.u32 1, %s1748_s7  }
  0x22   : > { %s1447_s12 = smul.u32 96, %s1855_s5  ;;  %s132_s13 = scalar_lea.sflag [#allocation3], %s1855_s5 }
  0x24   : > { %s1859_s15 = scalar_lea.vmem [#allocation2], %s1447_s12 }
  0x25   : > { %1735 = dma.done.wait (%p1828_p8), %s132_s13, 1536  }
  0x26   : > { %1737 = vsyncadd (%p1828_p8), %s132_s13, 4294965760  ;;  %v159_v0 = vld [vmem:[%s1859_s15 + $0x10] sm:$0xff]  ;;  %v157_v1 = vld [vmem:[%s1859_s15] sm:$0xff]  ;;  %vm211_vm0 = vcmask 64512   ;;  %v760_v46 = vlaneseq  ;;  %s1366_s16 = sshll.u32 %s1855_s5, 5  ;;  %s1444_s18 = sshll.u32 %s1756_s9, 5 }
  0x27   : > { %v173_v2 = vmul.f32 0.59460354, %v159_v0  ;;  %v171_v3 = vmul.f32 0.59460354, %v157_v1  ;;  %v1367_v4 = vld [vmem:[%s1859_s15 + $0x20] sm:$0xff]  ;;  %v1369_v5 = vld [vmem:[%s1859_s15 + $0x30] sm:$0xff]  ;;  %s1269_s24 = scalar_lea.hbm %s2549_s1, %s1444_s18 }
  0x28   : > { %v175_v6 = vmul.f32 0.59460354, %v1367_v4  ;;  %v177_v7 = vmul.f32 0.59460354, %v1369_v5  ;;  %v160_v8 = vld [vmem:[%s1859_s15 + $0x18] sm:$0xff]  ;;  %v158_v9 = vld [vmem:[%s1859_s15 + $0x8] sm:$0xff] }
  0x29   : > { %470 = vxpose.xlu0.b32.start.end [1/1] (short) %v173_v2, 128  ;;  %179 = vxpose.xlu1.b32.start.end [1/1] (short) %v171_v3, 128  ;;  %v174_v10 = vmul.f32 0.59460354, %v160_v8  ;;  %v172_v11 = vmul.f32 0.59460354, %v158_v9  ;;  %v1368_v36 = vld [vmem:[%s1859_s15 + $0x28] sm:$0xff]  ;;  %v1370_v37 = vld [vmem:[%s1859_s15 + $0x38] sm:$0xff] }
  0x2a   : > { %275 = vmatpush.msra.mxu0 %v175_v6  ;;  %565 = vmatpush.msra.mxu2 %v177_v7  ;;  %v176_v38 = vmul.f32 0.59460354, %v1368_v36  ;;  %v178_v39 = vmul.f32 0.59460354, %v1370_v37  ;;  %v1903_v49 = vand.u32 127, %v760_v46  ;;  %s154_s17 = scalar_lea.vmem [#allocation5], %s1366_s16 }
  0x2b   : > { %s1270_s25 = sshll.u32 %s154_s17, 4  ;;  %s1272_s26 = sshll.u32 %s1269_s24, 4  ;;  %s1271_s25 = int_to_ptr.vmem [resolvable:$true] %s1270_s25  ;;  %s1273_s26 = int_to_ptr.hbm [resolvable:$true] %s1272_s26 }
  0x2c   : > { %420 = vmatpush.msra.mxu1 %v176_v38  ;;  %710 = vmatpush.msra.mxu3 %v178_v39  ;;  %vm762_vm1 = vcmp.lt.s32.totalorder %v1903_v49, 16  ;;  %s1256_s9 = scalar_lea.sflag [#allocation4], %s1855_s5  ;;  %s1696_s27 = sshra.s32 %s1273_s26, 4  ;;  %s1697_s27 = int_to_ptr.hbm [resolvable:$true] %s1696_s27 }
  0x2d   : > { %s1698_s28 = scalar_lea.hbm %s1697_s27, 32  ;;  %s1702_s2 = scalar_lea.hbm %s2549_s1, 64 }
  0x2e   : > { %p1699_p4 = scmp.ne.s32.totalorder %s1697_s27, %s1698_s28  ;;  %p1703_p7 = scmp.lt.s32.totalorder %s1697_s27, %s2549_s1 }
  0x2f   : > { %p1704_p8 = scmp.lt.s32.totalorder %s1702_s2, %s1698_s28 }
  0x30   : > { %p1700_p5 = pnand %p1699_p4, %p1832_p9 }
  0x31   : > { %p1705_p10 = por %p1704_p8, %p1703_p7 }
  0x32   : > { %p1701_p6 = pneg %p1700_p5 }
  0x34   : > { %p1706_p13 = pnand %p1705_p10, %p1701_p6 }
  0xa9   : > { %615 = vxpose.xlu0.b32.start.end [1/1] (short) %v174_v10, 128  ;;  %325 = vxpose.xlu1.b32.start.end [1/1] (short) %v172_v11, 128 }
  0xcd   : > { %v486_v12 = vpop.trf.xlu0  ;;  %v195_v13 = vpop.trf.xlu1 }
  0xce   : > { %1375 = vmatmul.msk.f32.vlgmr.msra.gmra.mxu0 %vm211_vm0, %v195_v13  ;;  %1407 = vmatmul.msk.f32.vlgmr.msra.gmra.mxu2 %vm211_vm0, %v486_v12 }
  0xd5   : > { %v487_v14 = vpop.trf.xlu0  ;;  %v196_v15 = vpop.trf.xlu1 }
  0xd6   : > { %1376 = vmatmul.msk.f32.gmra.mxu0 %vm211_vm0, %v196_v15  ;;  %1408 = vmatmul.msk.f32.gmra.mxu2 %vm211_vm0, %v487_v14 }
  0xdd   : > { %v488_v16 = vpop.trf.xlu0  ;;  %v197_v17 = vpop.trf.xlu1 }
  0xde   : > { %1377 = vmatmul.msk.f32.gmra.mxu0 %vm211_vm0, %v197_v17  ;;  %1409 = vmatmul.msk.f32.gmra.mxu2 %vm211_vm0, %v488_v16 }
  0xe5   : > { %v489_v18 = vpop.trf.xlu0  ;;  %v198_v19 = vpop.trf.xlu1 }
  0xe6   : > { %1378 = vmatmul.msk.f32.gmra.mxu0 %vm211_vm0, %v198_v19  ;;  %1410 = vmatmul.msk.f32.gmra.mxu2 %vm211_vm0, %v489_v18 }
  0xed   : > { %v490_v20 = vpop.trf.xlu0  ;;  %v199_v21 = vpop.trf.xlu1 }
  0xee   : > { %1379 = vmatmul.msk.f32.gmra.mxu0 %vm211_vm0, %v199_v21  ;;  %1411 = vmatmul.msk.f32.gmra.mxu2 %vm211_vm0, %v490_v20 }
  0xf5   : > { %v491_v22 = vpop.trf.xlu0  ;;  %v200_v23 = vpop.trf.xlu1 }
  0xf6   : > { %1380 = vmatmul.msk.f32.gmra.mxu0 %vm211_vm0, %v200_v23  ;;  %1412 = vmatmul.msk.f32.gmra.mxu2 %vm211_vm0, %v491_v22 }
  0xfd   : > { %v492_v24 = vpop.trf.xlu0  ;;  %v201_v25 = vpop.trf.xlu1 }
  0xfe   : > { %1381 = vmatmul.msk.f32.gmra.mxu0 %vm211_vm0, %v201_v25  ;;  %1413 = vmatmul.msk.f32.gmra.mxu2 %vm211_vm0, %v492_v24 }
 0x105   : > { %v493_v26 = vpop.trf.xlu0  ;;  %v202_v27 = vpop.trf.xlu1 }
 0x106   : > { %1382 = vmatmul.msk.f32.gmra.mxu0 %vm211_vm0, %v202_v27  ;;  %1414 = vmatmul.msk.f32.gmra.mxu2 %vm211_vm0, %v493_v26 }
 0x10d   : > { %v494_v28 = vpop.trf.xlu0  ;;  %v203_v29 = vpop.trf.xlu1 }
 0x10e   : > { %1383 = vmatmul.msk.f32.gmra.mxu0 %vm211_vm0, %v203_v29  ;;  %1415 = vmatmul.msk.f32.gmra.mxu2 %vm211_vm0, %v494_v28 }
 0x115   : > { %v495_v30 = vpop.trf.xlu0  ;;  %v204_v31 = vpop.trf.xlu1 }
 0x116   : > { %1384 = vmatmul.msk.f32.gmra.mxu0 %vm211_vm0, %v204_v31  ;;  %1416 = vmatmul.msk.f32.gmra.mxu2 %vm211_vm0, %v495_v30 }
 0x11d   : > { %v496_v32 = vpop.trf.xlu0  ;;  %v205_v33 = vpop.trf.xlu1 }
 0x11e   : > { %1385 = vmatmul.msk.f32.gmra.mxu0 %vm211_vm0, %v205_v33  ;;  %1417 = vmatmul.msk.f32.gmra.mxu2 %vm211_vm0, %v496_v32 }
 0x125   : > { %v497_v34 = vpop.trf.xlu0  ;;  %v206_v35 = vpop.trf.xlu1 }
 0x126   : > { %1386 = vmatmul.msk.f32.gmra.mxu0 %vm211_vm0, %v206_v35  ;;  %1418 = vmatmul.msk.f32.gmra.mxu2 %vm211_vm0, %v497_v34 }
 0x12d   : > { %v498_v40 = vpop.trf.xlu0  ;;  %v207_v41 = vpop.trf.xlu1 }
 0x12e   : > { %1387 = vmatmul.msk.f32.gmra.mxu0 %vm211_vm0, %v207_v41  ;;  %1419 = vmatmul.msk.f32.gmra.mxu2 %vm211_vm0, %v498_v40 }
 0x135   : > { %v499_v42 = vpop.trf.xlu0  ;;  %v208_v43 = vpop.trf.xlu1 }
 0x136   : > { %1420 = vmatmul.msk.f32.gmra.mxu2 %vm211_vm0, %v499_v42  ;;  %1388 = vmatmul.msk.f32.gmra.mxu0 %vm211_vm0, %v208_v43 }
 0x13d   : > { %v500_v44 = vpop.trf.xlu0  ;;  %v209_v45 = vpop.trf.xlu1 }
 0x13e   : > { %1421 = vmatmul.msk.f32.gmra.mxu2 %vm211_vm0, %v500_v44  ;;  %1389 = vmatmul.msk.f32.gmra.mxu0 %vm211_vm0, %v209_v45 }
 0x145   : > { %v501_v47 = vpop.trf.xlu0  ;;  %v210_v48 = vpop.trf.xlu1 }
 0x146   : > { %1422 = vmatmul.msk.f32.gmra.mxu2 %vm211_vm0, %v501_v47  ;;  %1390 = vmatmul.msk.f32.gmra.mxu0 %vm211_vm0, %v210_v48 }
 0x14b   : > { %v277_v50 = vpop.f32.mrf.mxu0 }
 0x14c   : > { %v1910_v51 = vsel %vm762_vm1, %v277_v50, -1e+30 }
 0x14d   : > { %2588 = vst [vmem:[#allocation8_spill] sm:$0xff] %v1910_v51  ;;  %v631_v52 = vpop.trf.xlu0  ;;  %827 = vmax.xlane.f32.xlu2 %v1910_v51  ;;  %v341_v53 = vpop.trf.xlu1 }
 0x14e   : > { %1391 = vmatmul.msk.f32.vlgmr.msra.gmra.mxu1 %vm211_vm0, %v341_v53  ;;  %1423 = vmatmul.msk.f32.vlgmr.msra.gmra.mxu3 %vm211_vm0, %v631_v52 }
 0x151   : > { %v1915_v54 = vpop.f32.mrf.mxu2 }
 0x153   : > { %v1917_v55 = vpop.f32.mrf.mxu0 }
 0x155   : > { %v632_v56 = vpop.trf.xlu0  ;;  %v342_v57 = vpop.trf.xlu1 }
 0x156   : > { %1392 = vmatmul.msk.f32.gmra.mxu1 %vm211_vm0, %v342_v57  ;;  %1424 = vmatmul.msk.f32.gmra.mxu3 %vm211_vm0, %v632_v56 }
 0x159   : > { %v1921_v58 = vpop.f32.mrf.mxu2 }
 0x15a   : > { %v2008_v52 = vsel %vm762_vm1, %v1921_v58, -1e+30 }
 0x15b   : > { %v1923_v59 = vpop.f32.mrf.mxu0  ;;  %2590 = vst [vmem:[#allocation10_spill] sm:$0xff] %v2008_v52 }
 0x15d   : > { %v633_v60 = vpop.trf.xlu0  ;;  %v343_v61 = vpop.trf.xlu1 }
 0x15e   : > { %1393 = vmatmul.msk.f32.gmra.mxu1 %vm211_vm0, %v343_v61  ;;  %1425 = vmatmul.msk.f32.gmra.mxu3 %vm211_vm0, %v633_v60 }
 0x161   : > { %v1927_v62 = vpop.f32.mrf.mxu2 }
 0x163   : > { %v1929_v63 = vpop.f32.mrf.mxu0 }
 0x165   : > { %v634_v0 = vpop.trf.xlu0  ;;  %v344_v1 = vpop.trf.xlu1 }
 0x166   : > { %1394 = vmatmul.msk.f32.gmra.mxu1 %vm211_vm0, %v344_v1  ;;  %1426 = vmatmul.msk.f32.gmra.mxu3 %vm211_vm0, %v634_v0  ;;  %v2025_v1 = vsel %vm762_vm1, %v1917_v55, -1e+30 }
 0x167   : > { %2592 = vst [vmem:[#allocation12_spill] sm:$0xff] %v2025_v1 }
 0x169   : > { %v1933_v2 = vpop.f32.mrf.mxu2 }
 0x16b   : > { %v1935_v3 = vpop.f32.mrf.mxu0 }
 0x16d   : > { %v635_v4 = vpop.trf.xlu0  ;;  %v345_v5 = vpop.trf.xlu1 }
 0x16e   : > { %1395 = vmatmul.msk.f32.gmra.mxu1 %vm211_vm0, %v345_v5  ;;  %1427 = vmatmul.msk.f32.gmra.mxu3 %vm211_vm0, %v635_v4 }
 0x171   : > { %v1939_v6 = vpop.f32.mrf.mxu2 }
 0x173   : > { %v1941_v7 = vpop.f32.mrf.mxu0 }
 0x175   : > { %v636_v8 = vpop.trf.xlu0  ;;  %v346_v9 = vpop.trf.xlu1 }
 0x176   : > { %1396 = vmatmul.msk.f32.gmra.mxu1 %vm211_vm0, %v346_v9  ;;  %1428 = vmatmul.msk.f32.gmra.mxu3 %vm211_vm0, %v636_v8 }
 0x179   : > { %v1945_v10 = vpop.f32.mrf.mxu2 }
 0x17b   : > { %v1947_v11 = vpop.f32.mrf.mxu0 }
 0x17d   : > { %v637_v12 = vpop.trf.xlu0  ;;  %v347_v13 = vpop.trf.xlu1 }
 0x17e   : > { %1397 = vmatmul.msk.f32.gmra.mxu1 %vm211_vm0, %v347_v13  ;;  %1429 = vmatmul.msk.f32.gmra.mxu3 %vm211_vm0, %v637_v12 }
 0x181   : > { %v1951_v14 = vpop.f32.mrf.mxu2 }
 0x183   : > { %v1953_v15 = vpop.f32.mrf.mxu0 }
 0x185   : > { %v638_v16 = vpop.trf.xlu0  ;;  %v348_v17 = vpop.trf.xlu1 }
 0x186   : > { %1398 = vmatmul.msk.f32.gmra.mxu1 %vm211_vm0, %v348_v17  ;;  %1430 = vmatmul.msk.f32.gmra.mxu3 %vm211_vm0, %v638_v16 }
 0x189   : > { %v1957_v18 = vpop.f32.mrf.mxu2 }
 0x18b   : > { %v1959_v19 = vpop.f32.mrf.mxu0 }
 0x18d   : > { %v639_v20 = vpop.trf.xlu0  ;;  %v349_v21 = vpop.trf.xlu1 }
 0x18e   : > { %1399 = vmatmul.msk.f32.gmra.mxu1 %vm211_vm0, %v349_v21  ;;  %1431 = vmatmul.msk.f32.gmra.mxu3 %vm211_vm0, %v639_v20 }
 0x191   : > { %v1963_v22 = vpop.f32.mrf.mxu2 }
 0x193   : > { %v1965_v23 = vpop.f32.mrf.mxu0 }
 0x195   : > { %v640_v24 = vpop.trf.xlu0  ;;  %v350_v25 = vpop.trf.xlu1 }
 0x196   : > { %1400 = vmatmul.msk.f32.gmra.mxu1 %vm211_vm0, %v350_v25  ;;  %1432 = vmatmul.msk.f32.gmra.mxu3 %vm211_vm0, %v640_v24 }
 0x199   : > { %v1969_v26 = vpop.f32.mrf.mxu2 }
 0x19b   : > { %v1971_v27 = vpop.f32.mrf.mxu0 }
 0x19d   : > { %v641_v28 = vpop.trf.xlu0  ;;  %v351_v29 = vpop.trf.xlu1 }
 0x19e   : > { %1401 = vmatmul.msk.f32.gmra.mxu1 %vm211_vm0, %v351_v29  ;;  %1433 = vmatmul.msk.f32.gmra.mxu3 %vm211_vm0, %v641_v28 }
 0x1a1   : > { %v597_v30 = vpop.f32.mrf.mxu2 }
 0x1a3   : > { %v1975_v31 = vpop.f32.mrf.mxu0 }
 0x1a5   : > { %v642_v32 = vpop.trf.xlu0  ;;  %v352_v33 = vpop.trf.xlu1 }
 0x1a6   : > { %1402 = vmatmul.msk.f32.gmra.mxu1 %vm211_vm0, %v352_v33  ;;  %1434 = vmatmul.msk.f32.gmra.mxu3 %vm211_vm0, %v642_v32  ;;  %v2048_v32 = vsel %vm762_vm1, %v597_v30, -1e+30  ;;  %v2069_v30 = vsel %vm762_vm1, %v1975_v31, -1e+30  ;;  %v2091_v31 = vsel %vm762_vm1, %v1969_v26, -1e+30 }
 0x1a7   : > { %2598 = vst [vmem:[#allocation18_spill] sm:$0xff] %v2091_v31  ;;  %v2107_v26 = vsel %vm762_vm1, %v1915_v54, -1e+30 }
 0x1a8   : > { %2601 = vst [vmem:[#allocation21_spill] sm:$0xff] %v2107_v26 }
 0x1a9   : > { %v600_v34 = vpop.f32.mrf.mxu2 }
 0x1aa   : > { %v1981_v35 = vsel %vm762_vm1, %v600_v34, -1e+30 }
 0x1ab   : > { %913 = vmax.xlane.f32.xlu2 %v1981_v35  ;;  %v313_v36 = vpop.f32.mrf.mxu0 }
 0x1ac   : > { %v1986_v37 = vsel %vm762_vm1, %v313_v36, -1e+30 }
 0x1ad   : > { %851 = vmax.xlane.f32.xlu0 %v1986_v37  ;;  %v353_v38 = vpop.trf.xlu1  ;;  %v643_v44 = vpop.trf.xlu0 }
 0x1ae   : > { %1403 = vmatmul.msk.f32.gmra.mxu1 %vm211_vm0, %v353_v38  ;;  %1435 = vmatmul.msk.f32.gmra.mxu3 %vm211_vm0, %v643_v44  ;;  %v2085_v44 = vsel %vm762_vm1, %v1929_v63, -1e+30 }
 0x1af   : > { %2597 = vst [vmem:[#allocation17_spill] sm:$0xff] %v2085_v44 }
 0x1b1   : > { %v603_v51 = vpop.f32.mrf.mxu2 }
 0x1b5   : > { %v644_v48 = vpop.trf.xlu0  ;;  %v354_v63 = vpop.trf.xlu1 }
 0x1b6   : > { %1436 = vmatmul.msk.f32.gmra.mxu3 %vm211_vm0, %v644_v48  ;;  %1404 = vmatmul.msk.f32.gmra.mxu1 %vm211_vm0, %v354_v63 }
 0x1bd   : > { %v645_v56 = vpop.trf.xlu0 }
 0x1be   : > { %1437 = vmatmul.msk.f32.gmra.mxu3 %vm211_vm0, %v645_v56 }
 0x1c5   : > { %v646_v0 = vpop.trf.xlu0 }
 0x1c6   : > { %1438 = vmatmul.msk.f32.gmra.mxu3 %vm211_vm0, %v646_v0  ;;  %v2152_v0 = vpop.xlane.xlu2 %827 }
 0x1c7   : > { %2605 = vst [vmem:[#allocation25_spill] sm:$0xff] %v2152_v0  ;;  %v2235_v0 = vsel %vm762_vm1, %v603_v51, -1e+30 }
 0x1cb   : > { %v1990_v39 = vpop.f32.mrf.mxu1 }
 0x1d1   : > { %v1992_v40 = vpop.f32.mrf.mxu3 }
 0x1d3   : > { %v1994_v41 = vpop.f32.mrf.mxu1 }
 0x1d9   : > { %v715_v42 = vpop.f32.mrf.mxu3 }
 0x1db   : > { %v428_v43 = vpop.f32.mrf.mxu1 }
 0x1dc   : > { %v2014_v57 = vsel %vm762_vm1, %v428_v43, -1e+30 }
 0x1dd   : > { %2591 = vst [vmem:[#allocation11_spill] sm:$0xff] %v2014_v57 }
 0x1e1   : > { %v718_v45 = vpop.f32.mrf.mxu3 }
 0x1e2   : > { %v1999_v46 = vsel %vm762_vm1, %v718_v45, -1e+30  ;;  %v2096_v45 = vsel %vm762_vm1, %v715_v42, -1e+30  ;;  %v2114_v42 = vsel %vm762_vm1, %v1971_v27, -1e+30 }
 0x1e3   : > { %2589 = vst [vmem:[#allocation9_spill] sm:$0xff] %v1999_v46  ;;  %927 = vmax.xlane.f32.xlu0 %v1999_v46  ;;  %v2002_v47 = vpop.f32.mrf.mxu1  ;;  %v2132_v27 = vsel %vm762_vm1, %v1963_v22, -1e+30 }
 0x1e4   : > { %2599 = vst [vmem:[#allocation19_spill] sm:$0xff] %v2096_v45 }
 0x1e5   : > { %2603 = vst [vmem:[#allocation23_spill] sm:$0xff] %v2132_v27 }
 0x1e9   : > { %v721_v50 = vpop.f32.mrf.mxu3 }
 0x1ea   : > { %v2063_v36 = vsel %vm762_vm1, %v721_v50, -1e+30  ;;  %v2120_v50 = vsel %vm762_vm1, %v1994_v41, -1e+30 }
 0x1eb   : > { %893 = vmax.xlane.f32.xlu0 %v2008_v52  ;;  %v434_v53 = vpop.f32.mrf.mxu1  ;;  %2595 = vst [vmem:[#allocation15_spill] sm:$0xff] %v2063_v36 }
 0x1ec   : > { %v2074_v38 = vsel %vm762_vm1, %v434_v53, -1e+30  ;;  %2602 = vst [vmem:[#allocation22_spill] sm:$0xff] %v2120_v50  ;;  %v355_v53 = vpop.trf.xlu1 }
 0x1ed   : > { %2596 = vst [vmem:[#allocation16_spill] sm:$0xff] %v2074_v38  ;;  %1405 = vmatmul.msk.f32.gmra.mxu1 %vm211_vm0, %v355_v53  ;;  %v2220_v53 = vsel %vm762_vm1, %v1945_v10, -1e+30 }
 0x1ee   : > { %2614 = vst [vmem:[#allocation34_spill] sm:$0xff] %v2220_v53 }
 0x1f1   : > { %v2016_v60 = vpop.f32.mrf.mxu3 }
 0x1f3   : > { %863 = vmax.xlane.f32.xlu0 %v2014_v57  ;;  %v437_v61 = vpop.f32.mrf.mxu1  ;;  %v316_v57 = vpop.f32.mrf.mxu0 }
 0x1f4   : > { %v2053_v33 = vsel %vm762_vm1, %v437_v61, -1e+30  ;;  %v356_v41 = vpop.trf.xlu1  ;;  %v2144_v61 = vsel %vm762_vm1, %v1965_v23, -1e+30 }
 0x1f5   : > { %2593 = vst [vmem:[#allocation13_spill] sm:$0xff] %v2053_v33  ;;  %1406 = vmatmul.msk.f32.gmra.mxu1 %vm211_vm0, %v356_v41 }
 0x1f9   : > { %v2020_v58 = vpop.f32.mrf.mxu3 }
 0x1fa   : > { %v2228_v41 = vsel %vm762_vm1, %v2020_v58, -1e+30 }
 0x1fb   : > { %829 = vmax.xlane.f32.xlu0 %v2025_v1  ;;  %v2028_v4 = vpop.f32.mrf.mxu1  ;;  %2615 = vst [vmem:[#allocation35_spill] sm:$0xff] %v2228_v41 }
 0x201   : > { %v2030_v5 = vpop.f32.mrf.mxu3 }
 0x203   : > { %v2032_v8 = vpop.f32.mrf.mxu1 }
 0x204   : > { %v2212_v63 = vsel %vm762_vm1, %v2032_v8, -1e+30 }
 0x205   : > { %2612 = vst [vmem:[#allocation32_spill] sm:$0xff] %v2212_v63 }
 0x209   : > { %v733_v9 = vpop.f32.mrf.mxu3 }
 0x20a   : > { %v2164_v23 = vsel %vm762_vm1, %v733_v9, -1e+30 }
 0x20b   : > { %v2034_v12 = vpop.f32.mrf.mxu1  ;;  %2607 = vst [vmem:[#allocation27_spill] sm:$0xff] %v2164_v23 }
 0x211   : > { %v736_v13 = vpop.f32.mrf.mxu3 }
 0x212   : > { %v2138_v56 = vsel %vm762_vm1, %v736_v13, -1e+30  ;;  %v2157_v13 = vsel %vm762_vm1, %v1957_v18, -1e+30 }
 0x213   : > { %v449_v16 = vpop.f32.mrf.mxu1  ;;  %2604 = vst [vmem:[#allocation24_spill] sm:$0xff] %v2138_v56 }
 0x214   : > { %v2149_v22 = vsel %vm762_vm1, %v449_v16, -1e+30  ;;  %2606 = vst [vmem:[#allocation26_spill] sm:$0xff] %v2157_v13 }
 0x219   : > { %v739_v17 = vpop.f32.mrf.mxu3 }
 0x21a   : > { %v2101_v48 = vsel %vm762_vm1, %v739_v17, -1e+30 }
 0x21b   : > { %v452_v20 = vpop.f32.mrf.mxu1  ;;  %2600 = vst [vmem:[#allocation20_spill] sm:$0xff] %v2101_v48 }
 0x21c   : > { %v2125_v54 = vsel %vm762_vm1, %v452_v20, -1e+30  ;;  %v2172_v20 = vsel %vm762_vm1, %v1959_v19, -1e+30 }
 0x21e   : > { %v2160_v17 = vpop.xlane.xlu2 %913 }
 0x221   : > { %v742_v21 = vpop.f32.mrf.mxu3 }
 0x222   : > { %v2058_v34 = vsel %vm762_vm1, %v742_v21, -1e+30  ;;  %v2180_v21 = vsel %vm762_vm1, %v2034_v12, -1e+30 }
 0x223   : > { %v455_v24 = vpop.f32.mrf.mxu1  ;;  %2594 = vst [vmem:[#allocation14_spill] sm:$0xff] %v2058_v34 }
 0x224   : > { %v2079_v43 = vsel %vm762_vm1, %v455_v24, -1e+30  ;;  %v2188_v24 = vsel %vm762_vm1, %v1951_v14, -1e+30 }
 0x225   : > { %2609 = vst [vmem:[#allocation29_spill] sm:$0xff] %v2188_v24 }
 0x229   : > { %v745_v25 = vpop.f32.mrf.mxu3 }
 0x22a   : > { %v2038_v55 = vsel %vm762_vm1, %v745_v25, -1e+30  ;;  %v2196_v25 = vsel %vm762_vm1, %v2030_v5, -1e+30 }
 0x22b   : > { %945 = vmax.xlane.f32.xlu2 %v2038_v55  ;;  %v458_v28 = vpop.f32.mrf.mxu1  ;;  %2610 = vst [vmem:[#allocation30_spill] sm:$0xff] %v2196_v25 }
 0x22c   : > { %v2043_v29 = vsel %vm762_vm1, %v458_v28, -1e+30  ;;  %v2204_v28 = vsel %vm762_vm1, %v1953_v15, -1e+30 }
 0x22d   : > { %883 = vmax.xlane.f32.xlu1 %v2043_v29 }
 0x231   : > { %v748_v10 = vpop.f32.mrf.mxu3 }
 0x233   : > { %911 = vmax.xlane.f32.xlu2 %v2048_v32  ;;  %v461_v51 = vpop.f32.mrf.mxu1 }
 0x235   : > { %869 = vmax.xlane.f32.xlu1 %v2053_v33 }
 0x23b   : > { %943 = vmax.xlane.f32.xlu2 %v2058_v34  ;;  %v2350_v34 = vsel %vm762_vm1, %v2016_v60, -1e+30 }
 0x23c   : > { %2627 = vst [vmem:[#allocation47_spill] sm:$0xff] %v2350_v34 }
 0x23d   : > { %929 = vmax.xlane.f32.xlu1 %v2063_v36 }
 0x243   : > { %849 = vmax.xlane.f32.xlu2 %v2069_v30 }
 0x245   : > { %867 = vmax.xlane.f32.xlu1 %v2074_v38 }
 0x24b   : > { %881 = vmax.xlane.f32.xlu2 %v2079_v43 }
 0x24d   : > { %833 = vmax.xlane.f32.xlu1 %v2085_v44  ;;  %v2256_v44 = vsel %vm762_vm1, %v461_v51, -1e+30 }
 0x253   : > { %909 = vmax.xlane.f32.xlu2 %v2091_v31 }
 0x255   : > { %925 = vmax.xlane.f32.xlu1 %v2096_v45  ;;  %v606_v45 = vpop.f32.mrf.mxu2 }
 0x256   : > { %v2263_v46 = vsel %vm762_vm1, %v606_v45, -1e+30 }
 0x25b   : > { %941 = vmax.xlane.f32.xlu2 %v2101_v48 }
 0x25d   : > { %891 = vmax.xlane.f32.xlu1 %v2107_v26  ;;  %v2249_v26 = vsel %vm762_vm1, %v316_v57, -1e+30  ;;  %v751_v57 = vpop.f32.mrf.mxu3 }
 0x263   : > { %847 = vmax.xlane.f32.xlu2 %v2114_v42 }
 0x265   : > { %861 = vmax.xlane.f32.xlu1 %v2120_v50  ;;  %v2242_v50 = vsel %vm762_vm1, %v748_v10, -1e+30 }
 0x26a   : > { %v464_v45 = vpop.f32.mrf.mxu1 }
 0x26b   : > { %879 = vmax.xlane.f32.xlu2 %v2125_v54 }
 0x273   : > { %907 = vmax.xlane.f32.xlu2 %v2132_v27 }
 0x27b   : > { %939 = vmax.xlane.f32.xlu2 %v2138_v56  ;;  %v609_v56 = vpop.f32.mrf.mxu2 }
 0x283   : > { %845 = vmax.xlane.f32.xlu2 %v2144_v61 }
 0x28b   : > { %877 = vmax.xlane.f32.xlu2 %v2149_v22 }
 0x293   : > { %905 = vmax.xlane.f32.xlu2 %v2157_v13 }
 0x29b   : > { %937 = vmax.xlane.f32.xlu2 %v2164_v23 }
 0x29e   : > { %v2167_v16 = vpop.xlane.xlu2 %945 }
 0x2a3   : > { %843 = vmax.xlane.f32.xlu2 %v2172_v20 }
 0x2a6   : > { %v2175_v18 = vpop.xlane.xlu2 %911 }
 0x2ab   : > { %875 = vmax.xlane.f32.xlu2 %v2180_v21 }
 0x2ae   : > { %v2183_v9 = vpop.xlane.xlu2 %943 }
 0x2af   : > { %2608 = vst [vmem:[#allocation28_spill] sm:$0xff] %v2183_v9 }
 0x2b3   : > { %903 = vmax.xlane.f32.xlu2 %v2188_v24  ;;  %v2284_v24 = vsel %vm762_vm1, %v464_v45, -1e+30 }
 0x2b6   : > { %v2191_v19 = vpop.xlane.xlu2 %849 }
 0x2b7   : > { %v966_v49 = vsub.f32 %v2069_v30, %v2191_v19 }
 0x2bb   : > { %935 = vmax.xlane.f32.xlu2 %v2196_v25  ;;  %v319_v25 = vpop.f32.mrf.mxu0 }
 0x2be   : > { %v2199_v12 = vpop.xlane.xlu2 %881 }
 0x2c3   : > { %841 = vmax.xlane.f32.xlu2 %v2204_v28  ;;  %v322_v13 = vpop.f32.mrf.mxu0 }
 0x2c6   : > { %v2207_v14 = vpop.xlane.xlu2 %909 }
 0x2c7   : > { %2611 = vst [vmem:[#allocation31_spill] sm:$0xff] %v2207_v14  ;;  %v852_v14 = vpop.xlane.xlu0 %851 }
 0x2cb   : > { %873 = vmax.xlane.f32.xlu2 %v2212_v63 }
 0x2ce   : > { %v2215_v5 = vpop.xlane.xlu2 %941 }
 0x2cf   : > { %2613 = vst [vmem:[#allocation33_spill] sm:$0xff] %v2215_v5 }
 0x2d3   : > { %901 = vmax.xlane.f32.xlu2 %v2220_v53  ;;  %v2277_v53 = vsel %vm762_vm1, %v319_v25, -1e+30  ;;  %v754_v25 = vpop.f32.mrf.mxu3 }
 0x2d4   : > { %v2298_v38 = vsel %vm762_vm1, %v754_v25, -1e+30  ;;  %v612_v25 = vpop.f32.mrf.mxu2 }
 0x2d5   : > { %v2313_v33 = vsel %vm762_vm1, %v612_v25, -1e+30 }
 0x2d6   : > { %v2223_v15 = vpop.xlane.xlu2 %847 }
 0x2d7   : > { %v965_v30 = vsub.f32 %v2114_v42, %v2223_v15 }
 0x2d9   : > { %v1039_v42 = vmul.f32 1.442695, %v965_v30 }
 0x2db   : > { %933 = vmax.xlane.f32.xlu2 %v2228_v41  ;;  %v2270_v41 = vsel %vm762_vm1, %v751_v57, -1e+30 }
 0x2de   : > { %v2231_v8 = vpop.xlane.xlu2 %879 }
 0x2e3   : > { %915 = vmax.xlane.f32.xlu2 %v2235_v0 }
 0x2e6   : > { %v2238_v1 = vpop.xlane.xlu2 %907 }
 0x2e7   : > { %2616 = vst [vmem:[#allocation36_spill] sm:$0xff] %v2238_v1  ;;  %v2328_v1 = vsel %vm762_vm1, %v1947_v11, -1e+30 }
 0x2eb   : > { %947 = vmax.xlane.f32.xlu2 %v2242_v50 }
 0x2ee   : > { %v2245_v58 = vpop.xlane.xlu2 %939 }
 0x2ef   : > { %2617 = vst [vmem:[#allocation37_spill] sm:$0xff] %v2245_v58 }
 0x2f3   : > { %853 = vmax.xlane.f32.xlu2 %v2249_v26 }
 0x2f6   : > { %v2252_v52 = vpop.xlane.xlu2 %845 }
 0x2fb   : > { %885 = vmax.xlane.f32.xlu2 %v2256_v44 }
 0x2fe   : > { %v2259_v10 = vpop.xlane.xlu2 %877 }
 0x303   : > { %917 = vmax.xlane.f32.xlu2 %v2263_v46 }
 0x306   : > { %v2266_v36 = vpop.xlane.xlu2 %905 }
 0x307   : > { %2618 = vst [vmem:[#allocation38_spill] sm:$0xff] %v2266_v36  ;;  %v778_v36 = vsel %vm762_vm1, %v322_v13, -1e+30 }
 0x30b   : > { %949 = vmax.xlane.f32.xlu2 %v2270_v41 }
 0x30e   : > { %v2273_v51 = vpop.xlane.xlu2 %937 }
 0x30f   : > { %2619 = vst [vmem:[#allocation39_spill] sm:$0xff] %v2273_v51  ;;  %v2291_v51 = vsel %vm762_vm1, %v609_v56, -1e+30  ;;  %v467_v56 = vpop.f32.mrf.mxu1 }
 0x310   : > { %v794_v5 = vsel %vm762_vm1, %v467_v56, -1e+30 }
 0x313   : > { %855 = vmax.xlane.f32.xlu2 %v2277_v53 }
 0x316   : > { %v2280_v23 = vpop.xlane.xlu2 %843 }
 0x31b   : > { %887 = vmax.xlane.f32.xlu2 %v2284_v24 }
 0x31e   : > { %v2287_v57 = vpop.xlane.xlu2 %875 }
 0x323   : > { %919 = vmax.xlane.f32.xlu2 %v2291_v51 }
 0x326   : > { %v2294_v58 = vpop.xlane.xlu2 %903 }
 0x327   : > { %2620 = vst [vmem:[#allocation40_spill] sm:$0xff] %v2294_v58 }
 0x32b   : > { %951 = vmax.xlane.f32.xlu2 %v2298_v38 }
 0x32e   : > { %v2301_v45 = vpop.xlane.xlu2 %935 }
 0x32f   : > { %2621 = vst [vmem:[#allocation41_spill] sm:$0xff] %v2301_v45  ;;  %v757_v45 = vpop.f32.mrf.mxu3 }
 0x330   : > { %v2320_v13 = vsel %vm762_vm1, %v757_v45, -1e+30 }
 0x333   : > { %857 = vmax.xlane.f32.xlu2 %v778_v36 }
 0x336   : > { %v2305_v48 = vpop.xlane.xlu2 %841 }
 0x33b   : > { %889 = vmax.xlane.f32.xlu2 %v794_v5 }
 0x33e   : > { %v2309_v58 = vpop.xlane.xlu2 %873 }
 0x33f   : > { %2622 = vst [vmem:[#allocation42_spill] sm:$0xff] %v2309_v58 }
 0x343   : > { %921 = vmax.xlane.f32.xlu2 %v2313_v33 }
 0x346   : > { %v2316_v27 = vpop.xlane.xlu2 %901 }
 0x347   : > { %2623 = vst [vmem:[#allocation43_spill] sm:$0xff] %v2316_v27  ;;  %v2336_v27 = vsel %vm762_vm1, %v2028_v4, -1e+30 }
 0x348   : > { %2625 = vst [vmem:[#allocation45_spill] sm:$0xff] %v2336_v27 }
 0x34b   : > { %953 = vmax.xlane.f32.xlu2 %v2320_v13 }
 0x34e   : > { %v2323_v56 = vpop.xlane.xlu2 %933 }
 0x34f   : > { %2624 = vst [vmem:[#allocation44_spill] sm:$0xff] %v2323_v56  ;;  %v2344_v56 = vsel %vm762_vm1, %v1939_v6, -1e+30 }
 0x350   : > { %2626 = vst [vmem:[#allocation46_spill] sm:$0xff] %v2344_v56 }
 0x353   : > { %839 = vmax.xlane.f32.xlu2 %v2328_v1 }
 0x356   : > { %v2331_v25 = vpop.xlane.xlu2 %915 }
 0x35b   : > { %871 = vmax.xlane.f32.xlu2 %v2336_v27  ;;  %v2356_v27 = vsel %vm762_vm1, %v1941_v7, -1e+30 }
 0x35c   : > { %2628 = vst [vmem:[#allocation48_spill] sm:$0xff] %v2356_v27 }
 0x35e   : > { %v2339_v45 = vpop.xlane.xlu2 %947 }
 0x363   : > { %899 = vmax.xlane.f32.xlu2 %v2344_v56  ;;  %v2364_v56 = vsel %vm762_vm1, %v1933_v2, -1e+30 }
 0x364   : > { %2629 = vst [vmem:[#allocation49_spill] sm:$0xff] %v2364_v56 }
 0x366   : > { %v854_v11 = vpop.xlane.xlu2 %853 }
 0x36b   : > { %931 = vmax.xlane.f32.xlu2 %v2350_v34  ;;  %v2372_v34 = vsel %vm762_vm1, %v1935_v3, -1e+30 }
 0x36c   : > { %2630 = vst [vmem:[#allocation50_spill] sm:$0xff] %v2372_v34 }
 0x36e   : > { %v886_v4 = vpop.xlane.xlu2 %885 }
 0x373   : > { %837 = vmax.xlane.f32.xlu2 %v2356_v27  ;;  %v2378_v27 = vsel %vm762_vm1, %v1927_v62, -1e+30 }
 0x374   : > { %2631 = vst [vmem:[#allocation51_spill] sm:$0xff] %v2378_v27 }
 0x376   : > { %v2359_v6 = vpop.xlane.xlu2 %917 }
 0x37b   : > { %897 = vmax.xlane.f32.xlu2 %v2364_v56  ;;  %v2384_v56 = vsel %vm762_vm1, %v2002_v47, -1e+30 }
 0x37c   : > { %2632 = vst [vmem:[#allocation52_spill] sm:$0xff] %v2384_v56 }
 0x37e   : > { %v2367_v60 = vpop.xlane.xlu2 %949 }
 0x383   : > { %835 = vmax.xlane.f32.xlu2 %v2372_v34  ;;  %v2390_v34 = vsel %vm762_vm1, %v1923_v59, -1e+30  ;;  %v2405_v59 = vsel %vm762_vm1, %v1990_v39, -1e+30 }
 0x384   : > { %2633 = vst [vmem:[#allocation53_spill] sm:$0xff] %v2390_v34 }
 0x386   : > { %v856_v7 = vpop.xlane.xlu2 %855 }
 0x38b   : > { %895 = vmax.xlane.f32.xlu2 %v2378_v27  ;;  %v2398_v27 = vsel %vm762_vm1, %v1992_v40, -1e+30  ;;  %v967_v40 = vsub.f32 %v1986_v37, %v852_v14  ;;  %v884_v37 = vpop.xlane.xlu1 %883 }
 0x38c   : > { %2634 = vst [vmem:[#allocation54_spill] sm:$0xff] %v2398_v27  ;;  %v983_v14 = vsub.f32 %v2043_v29, %v884_v37  ;;  %v964_v29 = vsub.f32 %v2144_v61, %v2252_v52  ;;  %v963_v52 = vsub.f32 %v2172_v20, %v2280_v23  ;;  %v998_v23 = vsub.f32 %v1981_v35, %v2160_v17 }
 0x38d   : > { %v1016_v35 = vsub.f32 %v2270_v41, %v2367_v60 }
 0x38e   : > { %v888_v2 = vpop.xlane.xlu2 %887 }
 0x393   : > { %865 = vmax.xlane.f32.xlu2 %v2384_v56  ;;  %v969_v56 = vsub.f32 %v2277_v53, %v856_v7  ;;  %v1043_v7 = vmul.f32 1.442695, %v967_v40  ;;  %v2429_v40 = vpop.xlane.xlu1 %869 }
 0x395   : > { %v1047_v63 = vmul.f32 1.442695, %v969_v56 }
 0x396   : > { %v920_v3 = vpop.xlane.xlu2 %919 }
 0x39b   : > { %831 = vmax.xlane.f32.xlu2 %v2390_v34  ;;  %v968_v34 = vsub.f32 %v2249_v26, %v854_v11  ;;  %v984_v26 = vsub.f32 %v2256_v44, %v886_v4  ;;  %v1001_v44 = vsub.f32 %v2291_v51, %v920_v3  ;;  %v1075_v4 = vmul.f32 1.442695, %v983_v14 }
 0x39d   : > { %v1111_v51 = vmul.f32 1.442695, %v1001_v44 }
 0x39e   : > { %v2393_v62 = vpop.xlane.xlu2 %951 }
 0x3a3   : > { %923 = vmax.xlane.f32.xlu2 %v2398_v27  ;;  %v1045_v27 = vmul.f32 1.442695, %v968_v34  ;;  %v1041_v34 = vmul.f32 1.442695, %v966_v49  ;;  %v980_v49 = vsub.f32 %v2149_v22, %v2259_v10  ;;  %v997_v22 = vsub.f32 %v2048_v32, %v2175_v18 }
 0x3a4   : > { %v1015_v32 = vsub.f32 %v2242_v50, %v2339_v45  ;;  %v1141_v18 = vmul.f32 1.442695, %v1016_v35 }
 0x3a5   : > { %v1103_v37 = vmul.f32 1.442695, %v997_v22 }
 0x3a6   : > { %v858_v47 = vpop.xlane.xlu2 %857 }
 0x3a7   : > { %v970_v9 = vsub.f32 %v778_v36, %v858_v47  ;;  %v985_v36 = vsub.f32 %v2284_v24, %v888_v2  ;;  %v1077_v24 = vmul.f32 1.442695, %v984_v26 }
 0x3a9   : > { %v1049_v31 = vmul.f32 1.442695, %v970_v9 }
 0x3ab   : > { %1516 = vpow2.f32 %v1049_v31  ;;  %859 = vmax.xlane.f32.xlu2 %v2405_v59  ;;  %v1079_v31 = vmul.f32 1.442695, %v985_v36 }
 0x3ac   : > { %1518 = vpow2.f32 %v1047_v63 }
 0x3ad   : > { %1520 = vpow2.f32 %v1045_v27 }
 0x3ae   : > { %v890_v58 = vpop.xlane.xlu2 %889 }
 0x3af   : > { %v986_v9 = vsub.f32 %v794_v5, %v890_v58  ;;  %v982_v58 = vsub.f32 %v2079_v43, %v2199_v12  ;;  %v981_v43 = vsub.f32 %v2125_v54, %v2231_v8  ;;  %v1037_v12 = vmul.f32 1.442695, %v964_v29 }
 0x3b0   : > { %v1017_v54 = vsub.f32 %v2298_v38, %v2393_v62 }
 0x3b1   : > { %v1517_v53 = vpop.eup %1516  ;;  %v1081_v39 = vmul.f32 1.442695, %v986_v9  ;;  %v1073_v3 = vmul.f32 1.442695, %v982_v58  ;;  %v1071_v20 = vmul.f32 1.442695, %v981_v43 }
 0x3b2   : > { %1147 = vmatpush.xpose.msrb.mxu0 %v1517_v53  ;;  %v1519_v56 = vpop.eup %1518  ;;  %v1143_v17 = vmul.f32 1.442695, %v1017_v54 }
 0x3b3   : > { %1522 = vpow2.f32 %v1081_v39  ;;  %v1521_v19 = vpop.eup %1520  ;;  %v1105_v39 = vmul.f32 1.442695, %v998_v23  ;;  %v2645_v23 = vld [vmem:[#allocation33_spill] sm:$0xff] }
 0x3b4   : > { %1524 = vpow2.f32 %v1043_v7  ;;  %v1069_v7 = vmul.f32 1.442695, %v980_v49 }
 0x3b5   : > { %1526 = vpow2.f32 %v1079_v31 }
 0x3b6   : > { %1148 = vmatpush.xpose.msrb.mxu0 %v1519_v56  ;;  %v922_v63 = vpop.xlane.xlu2 %921  ;;  %1528 = vpow2.f32 %v1041_v34  ;;  %v2451_v34 = vpop.xlane.xlu1 %929 }
 0x3b7   : > { %v1002_v27 = vsub.f32 %v2313_v33, %v922_v63  ;;  %1530 = vpow2.f32 %v1077_v24  ;;  %v1000_v33 = vsub.f32 %v2263_v46, %v2359_v6  ;;  %v999_v46 = vsub.f32 %v2235_v0, %v2331_v25  ;;  %v2635_v24 = vld [vmem:[#allocation42_spill] sm:$0xff]  ;;  %v2636_v63 = vld [vmem:[#allocation32_spill] sm:$0xff] }
 0x3b8   : > { %v1035_v0 = vmul.f32 1.442695, %v963_v52  ;;  %v978_v50 = vsub.f32 %v2636_v63, %v2635_v24  ;;  %v2643_v52 = vld [vmem:[#allocation23_spill] sm:$0xff] }
 0x3b9   : > { %v1523_v5 = vpop.eup %1522  ;;  %v1113_v11 = vmul.f32 1.442695, %v1002_v27  ;;  %v1109_v9 = vmul.f32 1.442695, %v1000_v33  ;;  %v1107_v25 = vmul.f32 1.442695, %v999_v46 }
 0x3ba   : > { %1149 = vmatpush.xpose.msrb.mxu0 %v1521_v19  ;;  %1170 = vmatpush.xpose.msrb.mxu1 %v1523_v5  ;;  %v1525_v15 = vpop.eup %1524  ;;  %v2637_v27 = vld [vmem:[#allocation31_spill] sm:$0xff]  ;;  %v2638_v19 = vld [vmem:[#allocation18_spill] sm:$0xff]  ;;  %v1139_v5 = vmul.f32 1.442695, %v1015_v32  ;;  %v1065_v33 = vmul.f32 1.442695, %v978_v50 }
 0x3bb   : > { %1532 = vpow2.f32 %v1113_v11  ;;  %v1527_v2 = vpop.eup %1526  ;;  %v996_v44 = vsub.f32 %v2638_v19, %v2637_v27  ;;  %v2639_v11 = vld [vmem:[#allocation28_spill] sm:$0xff]  ;;  %v2653_v32 = vld [vmem:[#allocation29_spill] sm:$0xff] }
 0x3bc   : > { %1534 = vpow2.f32 %v1075_v4  ;;  %v1529_v47 = vpop.eup %1528  ;;  %v2640_v4 = vld [vmem:[#allocation14_spill] sm:$0xff] }
 0x3bd   : > { %1536 = vpow2.f32 %v1039_v42  ;;  %v1531_v36 = vpop.eup %1530  ;;  %v1013_v29 = vsub.f32 %v2640_v4, %v2639_v11  ;;  %v1101_v43 = vmul.f32 1.442695, %v996_v44 }
 0x3be   : > { %1150 = vmatpush.xpose.msrb.mxu0 %v1525_v15  ;;  %1171 = vmatpush.xpose.msrb.mxu1 %v1527_v2  ;;  %v954_v61 = vpop.xlane.xlu2 %953  ;;  %1538 = vpow2.f32 %v1111_v51  ;;  %v2641_v51 = vld [vmem:[#allocation45_spill] sm:$0xff] }
 0x3bf   : > { %v1018_v6 = vsub.f32 %v2320_v13, %v954_v61  ;;  %1540 = vpow2.f32 %v1073_v3  ;;  %v962_v13 = vsub.f32 %v2204_v28, %v2305_v48  ;;  %v979_v48 = vsub.f32 %v2180_v21, %v2287_v57 }
 0x3c0   : > { %1542 = vpow2.f32 %v1037_v12  ;;  %v1014_v57 = vsub.f32 %v2038_v55, %v2167_v16  ;;  %v2642_v12 = vld [vmem:[#allocation36_spill] sm:$0xff] }
 0x3c1   : > { %v1533_v8 = vpop.eup %1532  ;;  %v1145_v53 = vmul.f32 1.442695, %v1018_v6  ;;  %v1033_v31 = vmul.f32 1.442695, %v962_v13  ;;  %v1067_v14 = vmul.f32 1.442695, %v979_v48  ;;  %v995_v61 = vsub.f32 %v2643_v52, %v2642_v12 }
 0x3c2   : > { %1151 = vmatpush.xpose.msrb.mxu0 %v1529_v47  ;;  %1172 = vmatpush.xpose.msrb.mxu1 %v1531_v36  ;;  %v1535_v38 = vpop.eup %1534  ;;  %v1137_v16 = vmul.f32 1.442695, %v1014_v57  ;;  %v2644_v6 = vld [vmem:[#allocation13_spill] sm:$0xff]  ;;  %v2662_v12 = vld [vmem:[#allocation35_spill] sm:$0xff] }
 0x3c3   : > { %1544 = vpow2.f32 %v1145_v53  ;;  %1193 = vmatpush.xpose.msrb.mxu2 %v1533_v8  ;;  %v1537_v62 = vpop.eup %1536  ;;  %v976_v36 = vsub.f32 %v2644_v6, %v2429_v40  ;;  %v868_v8 = vpop.xlane.xlu1 %867  ;;  %v1099_v13 = vmul.f32 1.442695, %v995_v61  ;;  %v2650_v48 = vld [vmem:[#allocation37_spill] sm:$0xff] }
 0x3c4   : > { %1546 = vpow2.f32 %v1109_v9  ;;  %v1539_v10 = vpop.eup %1538  ;;  %v1135_v9 = vmul.f32 1.442695, %v1013_v29 }
 0x3c5   : > { %1548 = vpow2.f32 %v1071_v20  ;;  %v1541_v26 = vpop.eup %1540  ;;  %v2646_v20 = vld [vmem:[#allocation20_spill] sm:$0xff] }
 0x3c6   : > { %1550 = vpow2.f32 %v1035_v0  ;;  %1152 = vmatpush.xpose.msrb.mxu0 %v1537_v62  ;;  %v840_v28 = vpop.xlane.xlu2 %839  ;;  %1173 = vmatpush.xpose.msrb.mxu1 %v1535_v38  ;;  %v1543_v60 = vpop.eup %1542  ;;  %v1012_v53 = vsub.f32 %v2646_v20, %v2645_v23  ;;  %v2648_v38 = vld [vmem:[#allocation26_spill] sm:$0xff]  ;;  %v1061_v62 = vmul.f32 1.442695, %v976_v36  ;;  %v2664_v23 = vld [vmem:[#allocation47_spill] sm:$0xff] }
 0x3c7   : > { %1552 = vpow2.f32 %v1107_v25  ;;  %1194 = vmatpush.xpose.msrb.mxu2 %v1539_v10  ;;  %v961_v41 = vsub.f32 %v2328_v1, %v840_v28  ;;  %v2647_v25 = vld [vmem:[#allocation38_spill] sm:$0xff]  ;;  %v2651_v28 = vld [vmem:[#allocation24_spill] sm:$0xff] }
 0x3c8   : > { %1554 = vpow2.f32 %v1143_v17  ;;  %v994_v35 = vsub.f32 %v2648_v38, %v2647_v25 }
 0x3c9   : > { %v1545_v56 = vpop.eup %1544  ;;  %1556 = vpow2.f32 %v1105_v39  ;;  %v1031_v45 = vmul.f32 1.442695, %v961_v41  ;;  %v2649_v39 = vld [vmem:[#allocation16_spill] sm:$0xff] }
 0x3ca   : > { %v1547_v21 = vpop.eup %1546  ;;  %1558 = vpow2.f32 %v1069_v7  ;;  %1153 = vmatpush.xpose.msrb.mxu0 %v1543_v60  ;;  %1174 = vmatpush.xpose.msrb.mxu1 %v1541_v26  ;;  %v975_v22 = vsub.f32 %v2649_v39, %v868_v8  ;;  %v1133_v7 = vmul.f32 1.442695, %v1012_v53  ;;  %v1011_v26 = vsub.f32 %v2651_v28, %v2650_v48  ;;  %v2652_v60 = vld [vmem:[#allocation40_spill] sm:$0xff]  ;;  %v2666_v39 = vld [vmem:[#allocation49_spill] sm:$0xff] }
 0x3cb   : > { %v1549_v1 = vpop.eup %1548  ;;  %1560 = vpow2.f32 %v1033_v31  ;;  %1195 = vmatpush.xpose.msrb.mxu2 %v1547_v21  ;;  %1216 = vmatpush.xpose.msrb.mxu3 %v1545_v56  ;;  %v1097_v41 = vmul.f32 1.442695, %v994_v35  ;;  %v834_v36 = vpop.xlane.xlu1 %833 }
 0x3cc   : > { %v1551_v30 = vpop.eup %1550  ;;  %1562 = vpow2.f32 %v1141_v18  ;;  %v993_v18 = vsub.f32 %v2653_v32, %v2652_v60  ;;  %v1059_v21 = vmul.f32 1.442695, %v975_v22  ;;  %v1131_v57 = vmul.f32 1.442695, %v1011_v26  ;;  %v2668_v60 = vld [vmem:[#allocation19_spill] sm:$0xff] }
 0x3cd   : > { %v1553_v58 = vpop.eup %1552  ;;  %1564 = vpow2.f32 %v1103_v37 }
 0x3ce   : > { %v1555_v55 = vpop.eup %1554  ;;  %1566 = vpow2.f32 %v1067_v14  ;;  %1154 = vmatpush.xpose.msrb.mxu0 %v1551_v30  ;;  %v872_v42 = vpop.xlane.xlu2 %871  ;;  %1175 = vmatpush.xpose.msrb.mxu1 %v1549_v1  ;;  %v2654_v14 = vld [vmem:[#allocation39_spill] sm:$0xff]  ;;  %v1095_v50 = vmul.f32 1.442695, %v993_v18  ;;  %v2657_v30 = vld [vmem:[#allocation34_spill] sm:$0xff] }
 0x3cf   : > { %v1557_v15 = vpop.eup %1556  ;;  %1568 = vpow2.f32 %v1031_v45  ;;  %1196 = vmatpush.xpose.msrb.mxu2 %v1553_v58  ;;  %1217 = vmatpush.xpose.msrb.mxu3 %v1555_v55  ;;  %v977_v2 = vsub.f32 %v2641_v51, %v872_v42  ;;  %v2655_v1 = vld [vmem:[#allocation27_spill] sm:$0xff]  ;;  %v2658_v55 = vld [vmem:[#allocation41_spill] sm:$0xff]  ;;  %v2660_v42 = vld [vmem:[#allocation46_spill] sm:$0xff] }
 0x3d0   : > { %v1559_v3 = vpop.eup %1558  ;;  %1570 = vpow2.f32 %v1139_v5  ;;  %v1010_v24 = vsub.f32 %v2655_v1, %v2654_v14  ;;  %v2656_v45 = vld [vmem:[#allocation43_spill] sm:$0xff] }
 0x3d1   : > { %v1561_v47 = vpop.eup %1560  ;;  %1572 = vpow2.f32 %v1137_v16  ;;  %v1063_v49 = vmul.f32 1.442695, %v977_v2  ;;  %v992_v27 = vsub.f32 %v2657_v30, %v2656_v45  ;;  %v2659_v16 = vld [vmem:[#allocation30_spill] sm:$0xff] }
 0x3d2   : > { %v1563_v46 = vpop.eup %1562  ;;  %1155 = vmatpush.xpose.msrb.mxu0 %v1561_v47  ;;  %1176 = vmatpush.xpose.msrb.mxu1 %v1559_v3  ;;  %1574 = vpow2.f32 %v1065_v33  ;;  %v1129_v58 = vmul.f32 1.442695, %v1010_v24  ;;  %v1009_v11 = vsub.f32 %v2659_v16, %v2658_v55  ;;  %v2672_v55 = vld [vmem:[#allocation51_spill] sm:$0xff] }
 0x3d3   : > { %v1565_v54 = vpop.eup %1564  ;;  %1197 = vmatpush.xpose.msrb.mxu2 %v1557_v15  ;;  %1218 = vmatpush.xpose.msrb.mxu3 %v1563_v46  ;;  %1576 = vpow2.f32 %v1101_v43  ;;  %v1093_v29 = vmul.f32 1.442695, %v992_v27  ;;  %v2661_v43 = vld [vmem:[#allocation44_spill] sm:$0xff]  ;;  %v926_v26 = vpop.xlane.xlu1 %925 }
 0x3d4   : > { %v1567_v0 = vpop.eup %1566  ;;  %1578 = vpow2.f32 %v1135_v9  ;;  %v1127_v2 = vmul.f32 1.442695, %v1009_v11  ;;  %v1008_v52 = vsub.f32 %v2662_v12, %v2661_v43  ;;  %v2663_v9 = vld [vmem:[#allocation48_spill] sm:$0xff]  ;;  %v1004_v32 = vsub.f32 %v2668_v60, %v926_v26  ;;  %v2674_v12 = vld [vmem:[#allocation11_spill] sm:$0xff] }
 0x3d5   : > { %v1569_v17 = vpop.eup %1568  ;;  %1580 = vpow2.f32 %v1063_v49 }
 0x3d6   : > { %v1571_v40 = vpop.eup %1570  ;;  %1156 = vmatpush.xpose.msrb.mxu0 %v1569_v17  ;;  %v900_v10 = vpop.xlane.xlu2 %899  ;;  %1177 = vmatpush.xpose.msrb.mxu1 %v1567_v0  ;;  %1582 = vpow2.f32 %v1099_v13  ;;  %v1125_v8 = vmul.f32 1.442695, %v1008_v52  ;;  %v2665_v13 = vld [vmem:[#allocation15_spill] sm:$0xff]  ;;  %v1117_v24 = vmul.f32 1.442695, %v1004_v32 }
 0x3d7   : > { %1198 = vmatpush.xpose.msrb.mxu2 %v1565_v54  ;;  %1219 = vmatpush.xpose.msrb.mxu3 %v1571_v40  ;;  %v1573_v31 = vpop.eup %1572  ;;  %1584 = vpow2.f32 %v1061_v62  ;;  %v991_v15 = vsub.f32 %v2660_v42, %v900_v10  ;;  %v1006_v25 = vsub.f32 %v2665_v13, %v2451_v34  ;;  %v928_v17 = vpop.xlane.xlu0 %927  ;;  %v2667_v10 = vld [vmem:[#allocation9_spill] sm:$0xff] }
 0x3d8   : > { %v1575_v56 = vpop.eup %1574  ;;  %1586 = vpow2.f32 %v1133_v7  ;;  %v1005_v7 = vsub.f32 %v2667_v10, %v928_v17  ;;  %v1373_v10 = vld [vmem:[%s1859_s15 + $0x50] sm:$0xff] }
 0x3d9   : > { %v1577_v37 = vpop.eup %1576  ;;  %1588 = vpow2.f32 %v1097_v41  ;;  %v1091_v61 = vmul.f32 1.442695, %v991_v15  ;;  %v1121_v48 = vmul.f32 1.442695, %v1006_v25  ;;  %v2673_v15 = vld [vmem:[#allocation21_spill] sm:$0xff] }
 0x3da   : > { %1178 = vmatpush.xpose.msrb.mxu1 %v1575_v56  ;;  %v1579_v63 = vpop.eup %1578  ;;  %1590 = vpow2.f32 %v1059_v21  ;;  %v1119_v34 = vmul.f32 1.442695, %v1005_v7  ;;  %v2678_v25 = vld [vmem:[#allocation53_spill] sm:$0xff] }
 0x3db   : > { %1199 = vmatpush.xpose.msrb.mxu2 %v1577_v37  ;;  %1220 = vmatpush.xpose.msrb.mxu3 %v1573_v31  ;;  %v1581_v19 = vpop.eup %1580  ;;  %1592 = vpow2.f32 %v1131_v57  ;;  %v2669_v37 = vld [vmem:[#allocation17_spill] sm:$0xff]  ;;  %v2670_v57 = vld [vmem:[#allocation50_spill] sm:$0xff]  ;;  %v892_v27 = vpop.xlane.xlu1 %891 }
 0x3dc   : > { %v1583_v44 = vpop.eup %1582  ;;  %1594 = vpow2.f32 %v1095_v50  ;;  %v958_v21 = vsub.f32 %v2669_v37, %v834_v36 }
 0x3dd   : > { %v1585_v4 = vpop.eup %1584  ;;  %1596 = vpow2.f32 %v1129_v58 }
 0x3de   : > { %v932_v5 = vpop.xlane.xlu2 %931  ;;  %1179 = vmatpush.xpose.msrb.mxu1 %v1581_v19  ;;  %v1587_v33 = vpop.eup %1586  ;;  %1598 = vpow2.f32 %v1093_v29  ;;  %v1025_v30 = vmul.f32 1.442695, %v958_v21 }
 0x3df   : > { %1200 = vmatpush.xpose.msrb.mxu2 %v1583_v44  ;;  %1221 = vmatpush.xpose.msrb.mxu3 %v1579_v63  ;;  %v1589_v51 = vpop.eup %1588  ;;  %1600 = vpow2.f32 %v1127_v2  ;;  %v1007_v20 = vsub.f32 %v2664_v23, %v932_v5  ;;  %v894_v1 = vpop.xlane.xlu0 %893  ;;  %v2671_v5 = vld [vmem:[#allocation10_spill] sm:$0xff] }
 0x3e0   : > { %v1591_v3 = vpop.eup %1590  ;;  %1602 = vpow2.f32 %v1091_v61  ;;  %v988_v58 = vsub.f32 %v2671_v5, %v894_v1 }
 0x3e1   : > { %v1593_v47 = vpop.eup %1592  ;;  %v1123_v38 = vmul.f32 1.442695, %v1007_v20 }
 0x3e2   : > { %1180 = vmatpush.xpose.msrb.mxu1 %v1585_v4  ;;  %v1595_v46 = vpop.eup %1594 }
 0x3e3   : > { %1201 = vmatpush.xpose.msrb.mxu2 %v1589_v51  ;;  %1222 = vmatpush.xpose.msrb.mxu3 %v1587_v33  ;;  %v1597_v53 = vpop.eup %1596  ;;  %v987_v33 = vsub.f32 %v2673_v15, %v892_v27  ;;  %v1085_v51 = vmul.f32 1.442695, %v988_v58  ;;  %v862_v61 = vpop.xlane.xlu1 %861 }
 0x3e4   : > { %v1599_v0 = vpop.eup %1598 }
 0x3e5   : > { %v1601_v35 = vpop.eup %1600 }
 0x3e6   : > { %v838_v6 = vpop.xlane.xlu2 %837  ;;  %1181 = vmatpush.xpose.msrb.mxu1 %v1591_v3  ;;  %v1603_v40 = vpop.eup %1602  ;;  %v1083_v3 = vmul.f32 1.442695, %v987_v33 }
 0x3e7   : > { %1202 = vmatpush.xpose.msrb.mxu2 %v1595_v46  ;;  %1223 = vmatpush.xpose.msrb.mxu3 %v1593_v47  ;;  %v960_v54 = vsub.f32 %v2663_v9, %v838_v6  ;;  %v864_v42 = vpop.xlane.xlu0 %863  ;;  %v2675_v47 = vld [vmem:[#allocation52_spill] sm:$0xff]  ;;  %v2676_v9 = vld [vmem:[#allocation22_spill] sm:$0xff] }
 0x3e8   : > { %v973_v52 = vsub.f32 %v2674_v12, %v864_v42 }
 0x3e9   : > { %v1029_v49 = vmul.f32 1.442695, %v960_v54  ;;  %v972_v54 = vsub.f32 %v2676_v9, %v862_v61 }
 0x3eb   : > { %1604 = vpow2.f32 %v1029_v49  ;;  %1203 = vmatpush.xpose.msrb.mxu2 %v1599_v0  ;;  %1224 = vmatpush.xpose.msrb.mxu3 %v1597_v53  ;;  %v1053_v53 = vmul.f32 1.442695, %v972_v54  ;;  %v2677_v0 = vld [vmem:[#allocation12_spill] sm:$0xff] }
 0x3ec   : > { %1606 = vpow2.f32 %v1125_v8  ;;  %v1055_v8 = vmul.f32 1.442695, %v973_v52 }
 0x3ed   : > { %1608 = vpow2.f32 %v1123_v38 }
 0x3ee   : > { %v898_v62 = vpop.xlane.xlu2 %897 }
 0x3ef   : > { %1204 = vmatpush.xpose.msrb.mxu2 %v1603_v40  ;;  %1225 = vmatpush.xpose.msrb.mxu3 %v1601_v35  ;;  %v990_v22 = vsub.f32 %v2666_v39, %v898_v62  ;;  %v830_v23 = vpop.xlane.xlu0 %829  ;;  %v2679_v62 = vld [vmem:[#allocation25_spill] sm:$0xff]  ;;  %v2680_v39 = vld [vmem:[#allocation8_spill] sm:$0xff] }
 0x3f0   : > { %v956_v13 = vsub.f32 %v2677_v0, %v830_v23 }
 0x3f1   : > { %v1605_v28 = vpop.eup %1604  ;;  %v1089_v31 = vmul.f32 1.442695, %v990_v22  ;;  %v955_v22 = vsub.f32 %v2680_v39, %v2679_v62 }
 0x3f2   : > { %v1607_v41 = vpop.eup %1606  ;;  %1157 = vmatpush.xpose.msrb.mxu0 %v1605_v28  ;;  %v1021_v7 = vmul.f32 1.442695, %v956_v13 }
 0x3f3   : > { %1610 = vpow2.f32 %v1089_v31  ;;  %1226 = vmatpush.xpose.msrb.mxu3 %v1607_v41  ;;  %v1609_v18 = vpop.eup %1608  ;;  %v1019_v28 = vmul.f32 1.442695, %v955_v22  ;;  %v2681_v31 = vld [vmem:[#allocation54_spill] sm:$0xff] }
 0x3f4   : > { %1612 = vpow2.f32 %v1121_v48 }
 0x3f5   : > { %1614 = vpow2.f32 %v1119_v34 }
 0x3f6   : > { %v836_v56 = vpop.xlane.xlu2 %835 }
 0x3f7   : > { %1227 = vmatpush.xpose.msrb.mxu3 %v1609_v18  ;;  %v959_v14 = vsub.f32 %v2670_v57, %v836_v56  ;;  %v1768_v56 = vmov 1.0  }
 0x3f9   : > { %v1611_v63 = vpop.eup %1610  ;;  %v1027_v50 = vmul.f32 1.442695, %v959_v14 }
 0x3fa   : > { %v1613_v45 = vpop.eup %1612  ;;  %1205 = vmatpush.xpose.msrb.mxu2 %v1611_v63  ;;  %v1371_v63 = vld [vmem:[%s1859_s15 + $0x40] sm:$0xff] }
 0x3fb   : > { %1616 = vpow2.f32 %v1027_v50  ;;  %1228 = vmatpush.xpose.msrb.mxu3 %v1613_v45  ;;  %v1615_v19 = vpop.eup %1614  ;;  %v1372_v45 = vld [vmem:[%s1859_s15 + $0x48] sm:$0xff] }
 0x3fc   : > { %1618 = vpow2.f32 %v1117_v24  ;;  %v1374_v24 = vld [vmem:[%s1859_s15 + $0x58] sm:$0xff] }
 0x3fd   : > { %1620 = vpow2.f32 %v1025_v30 }
 0x3fe   : > { %v896_v44 = vpop.xlane.xlu2 %895 }
 0x3ff   : > { %v989_v16 = vsub.f32 %v2672_v55, %v896_v44  ;;  %1229 = vmatpush.xpose.msrb.mxu3 %v1615_v19 }
 0x401   : > { %v1617_v11 = vpop.eup %1616  ;;  %v1087_v4 = vmul.f32 1.442695, %v989_v16 }
 0x402   : > { %v1619_v29 = vpop.eup %1618  ;;  %1158 = vmatpush.xpose.msrb.mxu0 %v1617_v11 }
 0x403   : > { %1622 = vpow2.f32 %v1087_v4  ;;  %1230 = vmatpush.xpose.msrb.mxu3 %v1619_v29  ;;  %v1621_v2 = vpop.eup %1620 }
 0x404   : > { %1624 = vpow2.f32 %v1085_v51 }
 0x405   : > { %1626 = vpow2.f32 %v1083_v3 }
 0x406   : > { %v866_v43 = vpop.xlane.xlu2 %865  ;;  %1159 = vmatpush.xpose.msrb.mxu0 %v1621_v2 }
 0x407   : > { %v974_v46 = vsub.f32 %v2675_v47, %v866_v43 }
 0x409   : > { %v1623_v6 = vpop.eup %1622  ;;  %v1057_v36 = vmul.f32 1.442695, %v974_v46 }
 0x40a   : > { %1206 = vmatpush.xpose.msrb.mxu2 %v1623_v6  ;;  %v1625_v20 = vpop.eup %1624 }
 0x40b   : > { %1628 = vpow2.f32 %v1057_v36  ;;  %v1627_v35 = vpop.eup %1626 }
 0x40c   : > { %1630 = vpow2.f32 %v1055_v8 }
 0x40d   : > { %1632 = vpow2.f32 %v1053_v53 }
 0x40e   : > { %1207 = vmatpush.xpose.msrb.mxu2 %v1625_v20  ;;  %v832_v49 = vpop.xlane.xlu2 %831 }
 0x40f   : > { %v957_v38 = vsub.f32 %v2678_v25, %v832_v49 }
 0x411   : > { %v1629_v17 = vpop.eup %1628  ;;  %v1023_v40 = vmul.f32 1.442695, %v957_v38 }
 0x412   : > { %1182 = vmatpush.xpose.msrb.mxu1 %v1629_v17  ;;  %1208 = vmatpush.xpose.msrb.mxu2 %v1627_v35  ;;  %v1631_v48 = vpop.eup %1630 }
 0x413   : > { %1634 = vpow2.f32 %v1023_v40  ;;  %v1633_v34 = vpop.eup %1632 }
 0x414   : > { %1636 = vpow2.f32 %v1021_v7 }
 0x415   : > { %1209 = vmatmul.f32.vlgmr.msrb.gmra.mxu2 %v1373_v10  ;;  %1638 = vpow2.f32 %v1019_v28 }
 0x416   : > { %v924_v26 = vpop.xlane.xlu2 %923  ;;  %1183 = vmatpush.xpose.msrb.mxu1 %v1631_v48 }
 0x417   : > { %v1003_v41 = vsub.f32 %v2681_v31, %v924_v26 }
 0x419   : > { %v1635_v60 = vpop.eup %1634  ;;  %v1115_v32 = vmul.f32 1.442695, %v1003_v41 }
 0x41a   : > { %1160 = vmatpush.xpose.msrb.mxu0 %v1635_v60  ;;  %1184 = vmatpush.xpose.msrb.mxu1 %v1633_v34  ;;  %v1637_v18 = vpop.eup %1636 }
 0x41b   : > { %1640 = vpow2.f32 %v1115_v32  ;;  %v1639_v57 = vpop.eup %1638 }
 0x41d   : > { %1212 = vmatmul.f32.gmra.mxu2 %v1768_v56 }
 0x41e   : > { %v860_v37 = vpop.xlane.xlu2 %859  ;;  %1161 = vmatpush.xpose.msrb.mxu0 %v1637_v18 }
 0x41f   : > { %v971_v21 = vsub.f32 %v2405_v59, %v860_v37 }
 0x421   : > { %v1641_v14 = vpop.eup %1640  ;;  %v1051_v1 = vmul.f32 1.442695, %v971_v21 }
 0x422   : > { %1162 = vmatpush.xpose.msrb.mxu0 %v1639_v57  ;;  %1231 = vmatpush.xpose.msrb.mxu3 %v1641_v14 }
 0x423   : > { %1642 = vpow2.f32 %v1051_v1 }
 0x425   : > { %1232 = vmatmul.f32.vlgmr.msrb.gmra.mxu3 %v1374_v24  ;;  %1163 = vmatmul.f32.vlgmr.msrb.gmra.mxu0 %v1371_v63 }
 0x429   : > { %v1643_v50 = vpop.eup %1642 }
 0x42a   : > { %1185 = vmatpush.xpose.msrb.mxu1 %v1643_v50 }
 0x42d   : > { %1186 = vmatmul.f32.vlgmr.msrb.gmra.mxu1 %v1372_v45  ;;  %1235 = vmatmul.f32.gmra.mxu3 %v1768_v56 }
 0x42e   : > { %1166 = vmatmul.f32.gmra.mxu0 %v1768_v56 }
 0x435   : > { %1189 = vmatmul.f32.gmra.mxu1 %v1768_v56 }
 0x498   : > { %v1210_v30 = vpop.f32.mrf.mxu2 }
 0x4a0   : > { %v1213_v59 = vpop.f32.mrf.mxu2 }
 0x4a1   : > { %1644 = vrcp.f32 %v1213_v59 }
 0x4a2   : > { %v1164_v27 = vpop.f32.mrf.mxu0 }
 0x4a7   : > { %v1645_v19 = vpop.eup %1644 }
 0x4a8   : > { %v1233_v44 = vpop.f32.mrf.mxu3  ;;  %v1245_v5 = vperm.slane %v1645_v19, 0 }
 0x4aa   : > { %v1187_v58 = vpop.f32.mrf.mxu1  ;;  %v1249_v55 = vmul.f32 %v1245_v5, %v1210_v30 }
 0x4ab   : > { %v1167_v16 = vpop.f32.mrf.mxu0 }
 0x4ac   : > { %1646 = vrcp.f32 %v1167_v16  ;;  %1253 = vst [vmem:[%s154_s17 + $0x10] sm:$0xff] %v1249_v55 }
 0x4b0   : > { %v1236_v11 = vpop.f32.mrf.mxu3 }
 0x4b1   : > { %1648 = vrcp.f32 %v1236_v11 }
 0x4b2   : > { %v1647_v4 = vpop.eup %1646  ;;  %v1190_v29 = vpop.f32.mrf.mxu1 }
 0x4b3   : > { %v1243_v42 = vperm.slane %v1647_v4, 0  ;;  %1650 = vrcp.f32 %v1190_v29 }
 0x4b5   : > { %v1247_v15 = vmul.f32 %v1243_v42, %v1164_v27 }
 0x4b7   : > { %v1649_v33 = vpop.eup %1648  ;;  %1251 = vst [vmem:[%s154_s17] sm:$0xff] %v1247_v15 }
 0x4b8   : > { %v1246_v51 = vperm.slane %v1649_v33, 0 }
 0x4b9   : > { %v1651_v2 = vpop.eup %1650 }
 0x4ba   : > { %v1244_v3 = vperm.slane %v1651_v2, 0  ;;  %v1250_v43 = vmul.f32 %v1246_v51, %v1233_v44 }
 0x4bc   : > { %v1248_v12 = vmul.f32 %v1244_v3, %v1187_v58  ;;  %1254 = vst [vmem:[%s154_s17 + $0x18] sm:$0xff] %v1250_v43 }
 0x4be   : > { %1252 = vst [vmem:[%s154_s17 + $0x8] sm:$0xff] %v1248_v12 }
 0x4bf   : > { %1709 = shalt.err (!%p1706_p13)
}
 0x4c0   : > { %s1769_s5 = smov 128   ;;  %s1770_s12 = smov 8  }
 0x4c1   : > { %1450 = dma.vmem_to_hbm [thread:$0]  (%p1832_p9), %s1271_s25, 512, %s1273_s26, %s1256_s9, %s1769_s5, %s1769_s5, %s1770_s12  }
 0x4c2 PF: > { %s1287_s13 = sand.u32 1, %s1744_s6   ;;  %p1457_p0 = pnand %p1363_p12, %p1839_p11 }
 0x4c3   : > { %s1288_s15 = scalar_lea.sflag [#allocation4], %s1287_s13 }
 0x4c4   : > { %p1458_p1 = pneg %p1457_p0 }
 0x4c6   : > { %1739 = dma.done.wait (%p1458_p1), %s1288_s15, 512  }
 0x4c7   : > { %1741 = vsyncadd (%p1458_p1), %s1288_s15, 4294966784  ;;  %s17_s11 = sadd.s32 1, %s1764_s11   ;;  %s2682_s6 = smov %s1748_s7 }
 0x4c8   : > { %p14_p2 = scmp.ge.s32.totalorder %s17_s11, 4   ;;  %s2683_s7 = smov %s1752_s8 }
 0x4c9   : > { %s2684_s8 = smov %s1837_s20  ;;  %s2685_s9 = smov %s1760_s10 }
 0x4ca   : > { %s2686_s10 = smov %s2688_s14  ;;  %16 = sbr.rel (!%p14_p2) target bundleno = 6 (0x6), region = 71 }
 0x4cf   :  { %1294 = vsyncpa [#allocation3], 1 }
 0x4d0   :  { %1296 = vsyncpa [#allocation3 + $0x1], 1 }
 0x4d1   :  { %1297 = vsyncpa [#allocation4], 1 }
 0x4d2   :  { %1299 = vsyncpa [#allocation4 + $0x1], 1 }

</bundles_post_ra>
